<compile_context>
chip_gen: v7x
topology: tpu7x:2x2x1
jax: 0.10.0
libtpu: 0.0.40
codegen_flags: <defaults>
</compile_context>

<pallas_src>
import functools

import jax
import jax.numpy as jnp
from jax.experimental import pallas as pl
from jax.experimental.pallas import tpu as pltpu

DP = 128          # padded hidden width = one full lane register
N_LAYERS = 6


def _cdiv(a, b):
    return -(-a // b)


def _round_up(n, m):
    return ((n + m - 1) // m) * m


def _silu(x):
    # SiLU(x) = x*sigmoid(x) = 0.5*x*(1 + tanh(x/2)).  One EUP op (tanh); the
    # extra mul/add ride the VALU slack, and the result is numerically bounded
    # (no overflow for large-magnitude negative inputs).
    return 0.5 * x * (1.0 + jnp.tanh(0.5 * x))


def dqn_kernel(x_ref, w_ref, b_ref, o_ref, *, state_dim, n_action):
    # Layer 0: narrow (TB, state_dim) activation against the occupied slice of
    # the first weight tile (static slice, tiny, stays on-chip).
    x = x_ref[...].astype(jnp.bfloat16)                       # (TB, state_dim)
    w0 = w_ref[0][:state_dim, :]                               # (state_dim, DP) bf16
    h = jnp.dot(x, w0, preferred_element_type=jnp.float32) + b_ref[0]
    h = _silu(h)
    for i in range(1, N_LAYERS):                               # static -> unrolled
        h = jnp.dot(h.astype(jnp.bfloat16), w_ref[i],
                    preferred_element_type=jnp.float32) + b_ref[i]
        if i < N_LAYERS - 1:
            h = _silu(h)
    # Narrow store: only the real action lanes go back to HBM (masked vst, but
    # 32x less writeback than a lane-dense 128-wide store).
    o_ref[...] = h[:, :n_action].astype(o_ref.dtype)


def pack_params(params):
    """Pack 6 (W, b) pairs (W: (in, out) = PyTorch weight.T, b: (out,)) into
    zero-padded slabs: W-slab (6, DP, DP) bf16, b-slab (6, 1, DP) f32.
    Zero-padded weight columns + zero biases keep padded lanes exactly 0
    through every layer (SiLU(0) == 0), so padding never leaks."""
    assert len(params) == N_LAYERS
    w_slab = jnp.zeros((N_LAYERS, DP, DP), jnp.bfloat16)
    b_slab = jnp.zeros((N_LAYERS, 1, DP), jnp.float32)
    for i, (w, b) in enumerate(params):
        fi, fo = w.shape
        w_slab = w_slab.at[i, :fi, :fo].set(w.astype(jnp.bfloat16))
        b_slab = b_slab.at[i, 0, :fo].set(jnp.reshape(b, (-1,)).astype(jnp.float32))
    return w_slab, b_slab


@functools.partial(jax.jit, static_argnames=("n_action", "max_block_batch"))
def dqn_forward(x, w_slab, b_slab, *, n_action, max_block_batch=1024):
    """x: (batch, state_dim) f32. Returns (batch, n_action) f32 Q-values."""
    batch, state_dim = x.shape

    # Aim for ~2 batch tiles so v7x's two TensorCores both get work (the batch
    # axis is marked "parallel"), while keeping per-step overhead amortized.
    tb = max(8, min(max_block_batch, _round_up(_cdiv(batch, 2), 8)))
    batch_pad = _round_up(batch, tb)

    # Row-only zero pad (keeps padded rows finite through tanh-SiLU); at
    # state_dim lanes this is 8x cheaper than padding to 128 lanes, and it is
    # skipped entirely when batch is already a tile multiple.
    xp = x if batch_pad == batch else jnp.pad(x, ((0, batch_pad - batch), (0, 0)))

    kernel = functools.partial(dqn_kernel, state_dim=state_dim, n_action=n_action)
    out = pl.pallas_call(
        kernel,
        out_shape=jax.ShapeDtypeStruct((batch_pad, n_action), jnp.float32),
        grid=(batch_pad // tb,),
        in_specs=[
            pl.BlockSpec((tb, state_dim), lambda i: (i, 0)),        # x: tiled on batch, natural width
            pl.BlockSpec((N_LAYERS, DP, DP), lambda i: (0, 0, 0)),   # weights: VMEM-resident
            pl.BlockSpec((N_LAYERS, 1, DP), lambda i: (0, 0, 0)),    # biases:  VMEM-resident
        ],
        out_specs=pl.BlockSpec((tb, n_action), lambda i: (i, 0)),    # narrow output store
        compiler_params=pltpu.CompilerParams(
            dimension_semantics=("parallel",),                       # shard batch tiles across TCs
            vmem_limit_bytes=32 * 1024 * 1024,
        ),
    )(xp, w_slab, b_slab)

    return out if batch_pad == batch else out[:batch]


def init_params(key, state_dim, n_action, nb_neurons):
    """Mirrors nn.Linear's U(-1/sqrt(fan_in), 1/sqrt(fan_in)) init.
    Weights stored as (in, out) = PyTorch weight.T."""
    dims = [state_dim] + [nb_neurons] * 5 + [n_action]
    params = []
    for i in range(N_LAYERS):
        fan_in, fan_out = dims[i], dims[i + 1]
        key, kw, kb = jax.random.split(key, 3)
        bound = 1.0 / jnp.sqrt(jnp.float32(fan_in))
        w = jax.random.uniform(kw, (fan_in, fan_out), jnp.float32, -bound, bound)
        b = jax.random.uniform(kb, (fan_out,), jnp.float32, -bound, bound)
        params.append((w, b))
    return params


def dqn_reference(x, params):
    """Pure-JAX f32 reference matching the PyTorch forward."""
    h = x
    for i, (w, b) in enumerate(params):
        h = h @ w + b
        if i < N_LAYERS - 1:
            h = h * jax.nn.sigmoid(h)
    return h


if __name__ == "__main__":
    key = jax.random.PRNGKey(0)
    batch, state_dim, n_action, nb_neurons = 500, 16, 4, 32

    kx, kp = jax.random.split(key)
    x = jax.random.normal(kx, (batch, state_dim), jnp.float32)
    params = init_params(kp, state_dim, n_action, nb_neurons)
    w_slab, b_slab = pack_params(params)

    q = dqn_forward(x, w_slab, b_slab, n_action=n_action)
    q = jax.block_until_ready(q)

    q_ref = dqn_reference(x, params)
    assert q.shape == (batch, n_action)
    # Tolerance loosened vs the f32 reference: bf16 weight/activation casts on
    # the MXU path compound over 6 layers (expected quantization for DQN use).
    assert jnp.allclose(q, q_ref, atol=5e-2, rtol=5e-2), "mismatch vs reference"

    print("KERNEL_OK")
</pallas_src>

<mosaic_0001>
module attributes {stable_mosaic.version = 11 : i64} {
  func.func @dqn_kernel(%arg0: i32, %arg1: memref<256x16xf32, #tpu.memory_space<vmem>>, %arg2: memref<6x128x128xbf16, #tpu.memory_space<vmem>>, %arg3: memref<6x1x128xf32, #tpu.memory_space<vmem>>, %arg4: memref<256x4xf32, #tpu.memory_space<vmem>>) attributes {dimension_semantics = [#tpu.dimension_semantics<parallel>], iteration_bounds = array<i64: 2>, scalar_prefetch = 0 : i64, scratch_operands = 0 : i64, tpu.core_type = #tpu.core_type<tc>, window_params = [{transform_indices = @transform_0, window_bounds = array<i64: 256, 16>}, {pipeline_mode = #tpu.pipeline_mode<synchronous>, transform_indices = @transform_1, window_bounds = array<i64: 6, 128, 128>}, {pipeline_mode = #tpu.pipeline_mode<synchronous>, transform_indices = @transform_2, window_bounds = array<i64: 6, 1, 128>}, {transform_indices = @transform_3, window_bounds = array<i64: 256, 4>}]} {
    %c0 = arith.constant 0 : index
    %c0_0 = arith.constant 0 : index
    %0 = vector.load %arg1[%c0, %c0_0] : memref<256x16xf32, #tpu.memory_space<vmem>>, vector<256x16xf32>
    %1 = arith.truncf %0 : vector<256x16xf32> to vector<256x16xbf16>
    %c0_1 = arith.constant 0 : index
    %c0_2 = arith.constant 0 : index
    %c0_3 = arith.constant 0 : index
    %2 = vector.load %arg2[%c0_1, %c0_2, %c0_3] : memref<6x128x128xbf16, #tpu.memory_space<vmem>>, vector<1x128x128xbf16>
    %3 = vector.shape_cast %2 : vector<1x128x128xbf16> to vector<128x128xbf16>
    %4 = vector.extract_strided_slice %3 {offsets = [0, 0], sizes = [16, 128], strides = [1, 1]} : vector<128x128xbf16> to vector<16x128xbf16>
    %cst = arith.constant dense<0.000000e+00> : vector<256x128xf32>
    %5 = tpu.matmul %1, %4, %cst {dimension_numbers = #tpu.dot_dimension_numbers<[1], [0], [0], [1], [0, 0, 1, 1], [], []>} : vector<256x16xbf16>, vector<16x128xbf16>, vector<256x128xf32> -> vector<256x128xf32>
    %c0_4 = arith.constant 0 : index
    %c0_5 = arith.constant 0 : index
    %c0_6 = arith.constant 0 : index
    %6 = vector.load %arg3[%c0_4, %c0_5, %c0_6] : memref<6x1x128xf32, #tpu.memory_space<vmem>>, vector<1x1x128xf32>
    %7 = vector.shape_cast %6 : vector<1x1x128xf32> to vector<1x128xf32>
    %8 = vector.broadcast %7 : vector<1x128xf32> to vector<256x128xf32>
    %9 = arith.addf %5, %8 : vector<256x128xf32>
    %cst_7 = arith.constant 5.000000e-01 : f32
    %10 = vector.broadcast %cst_7 : f32 to vector<256x128xf32>
    %11 = arith.mulf %10, %9 : vector<256x128xf32>
    %cst_8 = arith.constant 5.000000e-01 : f32
    %12 = vector.broadcast %cst_8 : f32 to vector<256x128xf32>
    %13 = arith.mulf %12, %9 : vector<256x128xf32>
    %14 = math.tanh %13 : vector<256x128xf32>
    %cst_9 = arith.constant 1.000000e+00 : f32
    %15 = vector.broadcast %cst_9 : f32 to vector<256x128xf32>
    %16 = arith.addf %15, %14 : vector<256x128xf32>
    %17 = arith.mulf %11, %16 : vector<256x128xf32>
    %18 = arith.truncf %17 : vector<256x128xf32> to vector<256x128xbf16>
    %c1 = arith.constant 1 : index
    %c0_10 = arith.constant 0 : index
    %c0_11 = arith.constant 0 : index
    %19 = vector.load %arg2[%c1, %c0_10, %c0_11] : memref<6x128x128xbf16, #tpu.memory_space<vmem>>, vector<1x128x128xbf16>
    %20 = vector.shape_cast %19 : vector<1x128x128xbf16> to vector<128x128xbf16>
    %cst_12 = arith.constant dense<0.000000e+00> : vector<256x128xf32>
    %21 = tpu.matmul %18, %20, %cst_12 {dimension_numbers = #tpu.dot_dimension_numbers<[1], [0], [0], [1], [0, 0, 1, 1], [], []>} : vector<256x128xbf16>, vector<128x128xbf16>, vector<256x128xf32> -> vector<256x128xf32>
    %c1_13 = arith.constant 1 : index
    %c0_14 = arith.constant 0 : index
    %c0_15 = arith.constant 0 : index
    %22 = vector.load %arg3[%c1_13, %c0_14, %c0_15] : memref<6x1x128xf32, #tpu.memory_space<vmem>>, vector<1x1x128xf32>
    %23 = vector.shape_cast %22 : vector<1x1x128xf32> to vector<1x128xf32>
    %24 = vector.broadcast %23 : vector<1x128xf32> to vector<256x128xf32>
    %25 = arith.addf %21, %24 : vector<256x128xf32>
    %cst_16 = arith.constant 5.000000e-01 : f32
    %26 = vector.broadcast %cst_16 : f32 to vector<256x128xf32>
    %27 = arith.mulf %26, %25 : vector<256x128xf32>
    %cst_17 = arith.constant 5.000000e-01 : f32
    %28 = vector.broadcast %cst_17 : f32 to vector<256x128xf32>
    %29 = arith.mulf %28, %25 : vector<256x128xf32>
    %30 = math.tanh %29 : vector<256x128xf32>
    %cst_18 = arith.constant 1.000000e+00 : f32
    %31 = vector.broadcast %cst_18 : f32 to vector<256x128xf32>
    %32 = arith.addf %31, %30 : vector<256x128xf32>
    %33 = arith.mulf %27, %32 : vector<256x128xf32>
    %34 = arith.truncf %33 : vector<256x128xf32> to vector<256x128xbf16>
    %c2 = arith.constant 2 : index
    %c0_19 = arith.constant 0 : index
    %c0_20 = arith.constant 0 : index
    %35 = vector.load %arg2[%c2, %c0_19, %c0_20] : memref<6x128x128xbf16, #tpu.memory_space<vmem>>, vector<1x128x128xbf16>
    %36 = vector.shape_cast %35 : vector<1x128x128xbf16> to vector<128x128xbf16>
    %cst_21 = arith.constant dense<0.000000e+00> : vector<256x128xf32>
    %37 = tpu.matmul %34, %36, %cst_21 {dimension_numbers = #tpu.dot_dimension_numbers<[1], [0], [0], [1], [0, 0, 1, 1], [], []>} : vector<256x128xbf16>, vector<128x128xbf16>, vector<256x128xf32> -> vector<256x128xf32>
    %c2_22 = arith.constant 2 : index
    %c0_23 = arith.constant 0 : index
    %c0_24 = arith.constant 0 : index
    %38 = vector.load %arg3[%c2_22, %c0_23, %c0_24] : memref<6x1x128xf32, #tpu.memory_space<vmem>>, vector<1x1x128xf32>
    %39 = vector.shape_cast %38 : vector<1x1x128xf32> to vector<1x128xf32>
    %40 = vector.broadcast %39 : vector<1x128xf32> to vector<256x128xf32>
    %41 = arith.addf %37, %40 : vector<256x128xf32>
    %cst_25 = arith.constant 5.000000e-01 : f32
    %42 = vector.broadcast %cst_25 : f32 to vector<256x128xf32>
    %43 = arith.mulf %42, %41 : vector<256x128xf32>
    %cst_26 = arith.constant 5.000000e-01 : f32
    %44 = vector.broadcast %cst_26 : f32 to vector<256x128xf32>
    %45 = arith.mulf %44, %41 : vector<256x128xf32>
    %46 = math.tanh %45 : vector<256x128xf32>
    %cst_27 = arith.constant 1.000000e+00 : f32
    %47 = vector.broadcast %cst_27 : f32 to vector<256x128xf32>
    %48 = arith.addf %47, %46 : vector<256x128xf32>
    %49 = arith.mulf %43, %48 : vector<256x128xf32>
    %50 = arith.truncf %49 : vector<256x128xf32> to vector<256x128xbf16>
    %c3 = arith.constant 3 : index
    %c0_28 = arith.constant 0 : index
    %c0_29 = arith.constant 0 : index
    %51 = vector.load %arg2[%c3, %c0_28, %c0_29] : memref<6x128x128xbf16, #tpu.memory_space<vmem>>, vector<1x128x128xbf16>
    %52 = vector.shape_cast %51 : vector<1x128x128xbf16> to vector<128x128xbf16>
    %cst_30 = arith.constant dense<0.000000e+00> : vector<256x128xf32>
    %53 = tpu.matmul %50, %52, %cst_30 {dimension_numbers = #tpu.dot_dimension_numbers<[1], [0], [0], [1], [0, 0, 1, 1], [], []>} : vector<256x128xbf16>, vector<128x128xbf16>, vector<256x128xf32> -> vector<256x128xf32>
    %c3_31 = arith.constant 3 : index
    %c0_32 = arith.constant 0 : index
    %c0_33 = arith.constant 0 : index
    %54 = vector.load %arg3[%c3_31, %c0_32, %c0_33] : memref<6x1x128xf32, #tpu.memory_space<vmem>>, vector<1x1x128xf32>
    %55 = vector.shape_cast %54 : vector<1x1x128xf32> to vector<1x128xf32>
    %56 = vector.broadcast %55 : vector<1x128xf32> to vector<256x128xf32>
    %57 = arith.addf %53, %56 : vector<256x128xf32>
    %cst_34 = arith.constant 5.000000e-01 : f32
    %58 = vector.broadcast %cst_34 : f32 to vector<256x128xf32>
    %59 = arith.mulf %58, %57 : vector<256x128xf32>
    %cst_35 = arith.constant 5.000000e-01 : f32
    %60 = vector.broadcast %cst_35 : f32 to vector<256x128xf32>
    %61 = arith.mulf %60, %57 : vector<256x128xf32>
    %62 = math.tanh %61 : vector<256x128xf32>
    %cst_36 = arith.constant 1.000000e+00 : f32
    %63 = vector.broadcast %cst_36 : f32 to vector<256x128xf32>
    %64 = arith.addf %63, %62 : vector<256x128xf32>
    %65 = arith.mulf %59, %64 : vector<256x128xf32>
    %66 = arith.truncf %65 : vector<256x128xf32> to vector<256x128xbf16>
    %c4 = arith.constant 4 : index
    %c0_37 = arith.constant 0 : index
    %c0_38 = arith.constant 0 : index
    %67 = vector.load %arg2[%c4, %c0_37, %c0_38] : memref<6x128x128xbf16, #tpu.memory_space<vmem>>, vector<1x128x128xbf16>
    %68 = vector.shape_cast %67 : vector<1x128x128xbf16> to vector<128x128xbf16>
    %cst_39 = arith.constant dense<0.000000e+00> : vector<256x128xf32>
    %69 = tpu.matmul %66, %68, %cst_39 {dimension_numbers = #tpu.dot_dimension_numbers<[1], [0], [0], [1], [0, 0, 1, 1], [], []>} : vector<256x128xbf16>, vector<128x128xbf16>, vector<256x128xf32> -> vector<256x128xf32>
    %c4_40 = arith.constant 4 : index
    %c0_41 = arith.constant 0 : index
    %c0_42 = arith.constant 0 : index
    %70 = vector.load %arg3[%c4_40, %c0_41, %c0_42] : memref<6x1x128xf32, #tpu.memory_space<vmem>>, vector<1x1x128xf32>
    %71 = vector.shape_cast %70 : vector<1x1x128xf32> to vector<1x128xf32>
    %72 = vector.broadcast %71 : vector<1x128xf32> to vector<256x128xf32>
    %73 = arith.addf %69, %72 : vector<256x128xf32>
    %cst_43 = arith.constant 5.000000e-01 : f32
    %74 = vector.broadcast %cst_43 : f32 to vector<256x128xf32>
    %75 = arith.mulf %74, %73 : vector<256x128xf32>
    %cst_44 = arith.constant 5.000000e-01 : f32
    %76 = vector.broadcast %cst_44 : f32 to vector<256x128xf32>
    %77 = arith.mulf %76, %73 : vector<256x128xf32>
    %78 = math.tanh %77 : vector<256x128xf32>
    %cst_45 = arith.constant 1.000000e+00 : f32
    %79 = vector.broadcast %cst_45 : f32 to vector<256x128xf32>
    %80 = arith.addf %79, %78 : vector<256x128xf32>
    %81 = arith.mulf %75, %80 : vector<256x128xf32>
    %82 = arith.truncf %81 : vector<256x128xf32> to vector<256x128xbf16>
    %c5 = arith.constant 5 : index
    %c0_46 = arith.constant 0 : index
    %c0_47 = arith.constant 0 : index
    %83 = vector.load %arg2[%c5, %c0_46, %c0_47] : memref<6x128x128xbf16, #tpu.memory_space<vmem>>, vector<1x128x128xbf16>
    %84 = vector.shape_cast %83 : vector<1x128x128xbf16> to vector<128x128xbf16>
    %cst_48 = arith.constant dense<0.000000e+00> : vector<256x128xf32>
    %85 = tpu.matmul %82, %84, %cst_48 {dimension_numbers = #tpu.dot_dimension_numbers<[1], [0], [0], [1], [0, 0, 1, 1], [], []>} : vector<256x128xbf16>, vector<128x128xbf16>, vector<256x128xf32> -> vector<256x128xf32>
    %c5_49 = arith.constant 5 : index
    %c0_50 = arith.constant 0 : index
    %c0_51 = arith.constant 0 : index
    %86 = vector.load %arg3[%c5_49, %c0_50, %c0_51] : memref<6x1x128xf32, #tpu.memory_space<vmem>>, vector<1x1x128xf32>
    %87 = vector.shape_cast %86 : vector<1x1x128xf32> to vector<1x128xf32>
    %88 = vector.broadcast %87 : vector<1x128xf32> to vector<256x128xf32>
    %89 = arith.addf %85, %88 : vector<256x128xf32>
    %90 = vector.extract_strided_slice %89 {offsets = [0, 0], sizes = [256, 4], strides = [1, 1]} : vector<256x128xf32> to vector<256x4xf32>
    %c0_52 = arith.constant 0 : index
    %c0_53 = arith.constant 0 : index
    %91 = vector.load %arg4[%c0_52, %c0_53] : memref<256x4xf32, #tpu.memory_space<vmem>>, vector<256x4xf32>
    tpu.vector_store %arg4[%c0_52, %c0_53], %90 {strides = array<i32>} : memref<256x4xf32, #tpu.memory_space<vmem>>, vector<256x4xf32>,
    return
  }
  func.func @transform_0(%arg0: i32) -> (i32, i32) {
    %c0_i32 = arith.constant 0 : i32
    %c0_i32_0 = arith.constant 0 : i32
    return %arg0, %c0_i32 : i32, i32
  }
  func.func @transform_1(%arg0: i32) -> (i32, i32, i32) {
    %c0_i32 = arith.constant 0 : i32
    %c0_i32_0 = arith.constant 0 : i32
    %c0_i32_1 = arith.constant 0 : i32
    %c0_i32_2 = arith.constant 0 : i32
    return %c0_i32, %c0_i32_0, %c0_i32_1 : i32, i32, i32
  }
  func.func @transform_2(%arg0: i32) -> (i32, i32, i32) {
    %c0_i32 = arith.constant 0 : i32
    %c0_i32_0 = arith.constant 0 : i32
    %c0_i32_1 = arith.constant 0 : i32
    %c0_i32_2 = arith.constant 0 : i32
    return %c0_i32, %c0_i32_0, %c0_i32_1 : i32, i32, i32
  }
  func.func @transform_3(%arg0: i32) -> (i32, i32) {
    %c0_i32 = arith.constant 0 : i32
    %c0_i32_0 = arith.constant 0 : i32
    return %arg0, %c0_i32 : i32, i32
  }
}

</mosaic_0001>

<bundles_post_ra>
// kernel: dqn_forward.1
= control target key start
LH: loop header
LB: loop body
LE: loop exit
PB: predicated region body
PF: predicated region fallthrough
CT: control target
= control target key end

     0   :  { %s3410_s12 = smov 0   ;;  %s4095_s0 = inlined_call_operand.vmem [shape: f32[512,16], index: 0, kind: input, shape index: {}]   ;;  %s4096_s1 = inlined_call_operand.vmem [shape: bf16[6,128,128], index: 1, kind: input, shape index: {}]   ;;  %s4097_s2 = inlined_call_operand.vmem [shape: f32[6,1,128], index: 2, kind: input, shape index: {}]   ;;  %s4098_s3 = inlined_call_operand.vmem [shape: f32[512,4], index: 3, kind: output, shape index: {}]  }
   0x1 LB: > { %s2427_s13 = sadd.s32 4294967295, %s3388_s12   ;;  %p2431_p0 = scmp.ge.s32.totalorder %s3388_s12, 1  ;;  %s3388_s12 = sphi %s3410_s12, %s13_s12  }
   0x2   : > { %p138_p1 = scmp.lt.s32.totalorder %s3388_s12, 3 }
   0x4   : > { %p139_p2 = pnand %p2431_p0, %p138_p1 }
   0x5   : > { %v3021_v0 = vld [vmem:[%s4096_s1] sm:$0xff] (!%p139_p2)   ;;  %s2432_s16 = sshll.u32 (!%p139_p2), %s2427_s13, 5  ;;  %v3023_v2 = vld [vmem:[%s4096_s1 + $0x48] sm:$0xff] (!%p139_p2)   ;;  %vm238_vm0 = vcmask (!%p139_p2), 130048   ;;  %v3024_v51 = vld [vmem:[%s4096_s1 + $0x50] sm:$0xff] (!%p139_p2)   ;;  %vm2338_vm1 = vcmask (!%p139_p2), 31744  }
   0x6   : > { %142 = sbr.rel (%p139_p2) target bundleno = 1479 (0x5c7), region = 32  ;;  %p163_p3 = scmp.lt.s32.totalorder (!%p139_p2), %s2432_s16, 63  ;;  %2723 = vmatprep.subr.bf16.mxu0 (!%p139_p2), %v3021_v0  ;;  %v3022_v1 = vld [vmem:[%s4096_s1 + $0x40] sm:$0xff] (!%p139_p2)   ;;  %v3025_v52 = vld [vmem:[%s4096_s1 + $0x58] sm:$0xff] (!%p139_p2)   ;;  %v3027_v54 = vld [vmem:[%s4096_s1 + $0x68] sm:$0xff] (!%p139_p2)  }
   0x7   : > { %2724 = vmatpush3.bf16.msra.mxu0 (!%p139_p2), %v3021_v0  ;;  %2757 = vmatprep.subr.bf16.mxu1 (!%p139_p2), %v3022_v1  ;;  %v3026_v53 = vld [vmem:[%s4096_s1 + $0x60] sm:$0xff] (!%p139_p2)   ;;  %v3028_v55 = vld [vmem:[%s4096_s1 + $0x70] sm:$0xff] (!%p139_p2)   ;;  %v3029_v56 = vld [vmem:[%s4096_s1 + $0x78] sm:$0xff] (!%p139_p2)  }
   0x8   : > { %2758 = vmatpush3.bf16.msra.mxu1 (!%p139_p2), %v3022_v1  ;;  %v3030_v57 = vld [vmem:[%s4096_s1 + $0x80] sm:$0xff] (!%p139_p2)   ;;  %v3031_v58 = vld [vmem:[%s4096_s1 + $0x88] sm:$0xff] (!%p139_p2)   ;;  %v3032_v59 = vld [vmem:[%s4096_s1 + $0x90] sm:$0xff] (!%p139_p2)  }
   0x9   : > { %2759 = vmatprep.subr.bf16.mxu1 (!%p139_p2), %v3023_v2  ;;  %2805 = vmatprep.subr.bf16.mxu0 (!%p139_p2), %v3030_v57  ;;  %v3033_v60 = vld [vmem:[%s4096_s1 + $0x98] sm:$0xff] (!%p139_p2)   ;;  %v3034_v61 = vld [vmem:[%s4096_s1 + $0xa0] sm:$0xff] (!%p139_p2)  }
   0xa   : > { %v3521_v62 = vld [vmem:[%s4097_s2] ss:$0 sm:$0xff] (!%p139_p2) }
   0xc   : > { %2760 = vmatpush3.bf16.msra.mxu1 (!%p139_p2), %v3023_v2 }
   0xd   : > { %s4100_s16 = smov (!%p163_p3, %s2432_s16), 63  ;;  %2761 = vmatprep.subr.bf16.mxu1 %v3024_v51 }
   0xe   : > { %s2433_s21 = sshll.u32 %s4100_s16, 3 }
   0xf   : > { %s3435_s24 = scalar_lea.vmem %s4095_s0, %s2433_s21  ;;  %s3994_s18 = scalar_lea.vmem %s4098_s3, %s2433_s21 }
  0x10   : > { %v175_v3 = vld [vmem:[%s3435_s24] sm:$0xff]  ;;  %v176_v4 = vld [vmem:[%s3435_s24 + $0x8] sm:$0xff]  ;;  %v177_v5 = vld [vmem:[%s3435_s24 + $0x10] sm:$0xff]  ;;  %2762 = vmatpush3.bf16.msra.mxu1 %v3024_v51 }
  0x11   : > { %v207_v6 = vpack.c.bf16 %v176_v4, %v175_v3  ;;  %v178_v7 = vld [vmem:[%s3435_s24 + $0x18] sm:$0xff]  ;;  %v179_v8 = vld [vmem:[%s3435_s24 + $0x20] sm:$0xff]  ;;  %v180_v9 = vld [vmem:[%s3435_s24 + $0x28] sm:$0xff]  ;;  %2763 = vmatprep.subr.bf16.mxu1 %v3025_v52 }
  0x12   : > { %v208_v10 = vpack.c.bf16 %v178_v7, %v177_v5  ;;  %v209_v11 = vpack.c.bf16 %v180_v9, %v179_v8  ;;  %v181_v12 = vld [vmem:[%s3435_s24 + $0x30] sm:$0xff]  ;;  %v182_v13 = vld [vmem:[%s3435_s24 + $0x38] sm:$0xff]  ;;  %v183_v14 = vld [vmem:[%s3435_s24 + $0x40] sm:$0xff] }
  0x13   : > { %2725 = vmatprep.mubr.msk.bf16.mxu0 %vm238_vm0, %v207_v6  ;;  %v184_v15 = vld [vmem:[%s3435_s24 + $0x48] sm:$0xff]  ;;  %v210_v16 = vpack.c.bf16 %v182_v13, %v181_v12  ;;  %v185_v18 = vld [vmem:[%s3435_s24 + $0x50] sm:$0xff]  ;;  %v186_v19 = vld [vmem:[%s3435_s24 + $0x58] sm:$0xff] }
  0x14   : > { %2726 = vmatmul.mubr.msk.bf16.vlgmr.msra.gmra.mrb[0].mxu0 %vm238_vm0, %v208_v10  ;;  %v211_v17 = vpack.c.bf16 %v184_v15, %v183_v14  ;;  %v187_v20 = vld [vmem:[%s3435_s24 + $0x60] sm:$0xff]  ;;  %v188_v21 = vld [vmem:[%s3435_s24 + $0x68] sm:$0xff]  ;;  %v212_v22 = vpack.c.bf16 %v186_v19, %v185_v18  ;;  %v189_v24 = vld [vmem:[%s3435_s24 + $0x70] sm:$0xff]  ;;  %2764 = vmatpush3.bf16.msra.mxu1 %v3025_v52 }
  0x15   : > { %2729 = vmatprep.mubr.msk.bf16.mxu0 %vm238_vm0, %v209_v11  ;;  %v213_v23 = vpack.c.bf16 %v188_v21, %v187_v20  ;;  %v190_v25 = vld [vmem:[%s3435_s24 + $0x78] sm:$0xff]  ;;  %v191_v26 = vld [vmem:[%s3435_s24 + $0x80] sm:$0xff]  ;;  %v192_v27 = vld [vmem:[%s3435_s24 + $0x88] sm:$0xff]  ;;  %2765 = vmatprep.subr.bf16.mxu1 %v3026_v53 }
  0x16   : > { %v214_v28 = vpack.c.bf16 %v190_v25, %v189_v24  ;;  %v215_v29 = vpack.c.bf16 %v192_v27, %v191_v26  ;;  %v193_v30 = vld [vmem:[%s3435_s24 + $0x90] sm:$0xff]  ;;  %v194_v31 = vld [vmem:[%s3435_s24 + $0x98] sm:$0xff]  ;;  %v195_v32 = vld [vmem:[%s3435_s24 + $0xa0] sm:$0xff]  ;;  %2806 = vmatpush3.bf16.msra.mxu0 %v3030_v57 }
  0x17   : > { %v196_v33 = vld [vmem:[%s3435_s24 + $0xa8] sm:$0xff]  ;;  %v216_v34 = vpack.c.bf16 %v194_v31, %v193_v30  ;;  %v197_v36 = vld [vmem:[%s3435_s24 + $0xb0] sm:$0xff]  ;;  %v198_v37 = vld [vmem:[%s3435_s24 + $0xb8] sm:$0xff]  ;;  %2807 = vmatprep.subr.bf16.mxu0 %v3031_v58 }
  0x18   : > { %v217_v35 = vpack.c.bf16 %v196_v33, %v195_v32  ;;  %v199_v38 = vld [vmem:[%s3435_s24 + $0xc0] sm:$0xff]  ;;  %v200_v39 = vld [vmem:[%s3435_s24 + $0xc8] sm:$0xff]  ;;  %v218_v40 = vpack.c.bf16 %v198_v37, %v197_v36  ;;  %v201_v42 = vld [vmem:[%s3435_s24 + $0xd0] sm:$0xff]  ;;  %2766 = vmatpush3.bf16.msra.mxu1 %v3026_v53 }
  0x19   : > { %v219_v41 = vpack.c.bf16 %v200_v39, %v199_v38  ;;  %v202_v43 = vld [vmem:[%s3435_s24 + $0xd8] sm:$0xff]  ;;  %v203_v44 = vld [vmem:[%s3435_s24 + $0xe0] sm:$0xff]  ;;  %v204_v45 = vld [vmem:[%s3435_s24 + $0xe8] sm:$0xff]  ;;  %2767 = vmatprep.subr.bf16.mxu1 %v3027_v54 }
  0x1a   : > { %v220_v46 = vpack.c.bf16 %v202_v43, %v201_v42  ;;  %v221_v47 = vpack.c.bf16 %v204_v45, %v203_v44  ;;  %v205_v48 = vld [vmem:[%s3435_s24 + $0xf0] sm:$0xff]  ;;  %v206_v49 = vld [vmem:[%s3435_s24 + $0xf8] sm:$0xff]  ;;  %2808 = vmatpush3.bf16.msra.mxu0 %v3031_v58 }
  0x1b   : > { %v222_v50 = vpack.c.bf16 %v206_v49, %v205_v48  ;;  %2809 = vmatprep.subr.bf16.mxu0 %v3032_v59 }
  0x1c   : > { %2730 = vmatmul.mubr.msk.bf16.gmra.mrb[4].mxu0 %vm238_vm0, %v210_v16  ;;  %2768 = vmatpush3.bf16.msra.mxu1 %v3027_v54 }
  0x1d   : > { %2733 = vmatprep.mubr.msk.bf16.mxu0 %vm238_vm0, %v211_v17  ;;  %2769 = vmatprep.subr.bf16.mxu1 %v3028_v55 }
  0x1e   : > { %2810 = vmatpush3.bf16.msra.mxu0 %v3032_v59 }
  0x1f   : > { %2811 = vmatprep.subr.bf16.mxu0 %v3033_v60 }
  0x20   : > { %2770 = vmatpush3.bf16.msra.mxu1 %v3028_v55 }
  0x21   : > { %2771 = vmatprep.subr.bf16.mxu1 %v3029_v56 }
  0x22   : > { %2812 = vmatpush3.bf16.msra.mxu0 %v3033_v60 }
  0x23   : > { %2813 = vmatprep.subr.bf16.mxu0 %v3034_v61 }
  0x24   : > { %2734 = vmatmul.mubr.msk.bf16.gmra.mrb[8].mxu0 %vm238_vm0, %v212_v22  ;;  %2772 = vmatpush3.bf16.msra.mxu1 %v3029_v56 }
  0x25   : > { %2737 = vmatprep.mubr.msk.bf16.mxu0 %vm238_vm0, %v213_v23 }
  0x26   : > { %2814 = vmatpush3.bf16.msra.mxu0 %v3034_v61 }
  0x2c   : > { %2738 = vmatmul.mubr.msk.bf16.gmra.mrb[12].mxu0 %vm238_vm0, %v214_v28 }
  0x2d   : > { %2741 = vmatprep.mubr.msk.bf16.mxu0 %vm238_vm0, %v215_v29 }
  0x34   : > { %2742 = vmatmul.mubr.msk.bf16.gmra.mrb[16].mxu0 %vm238_vm0, %v216_v34 }
  0x35   : > { %2745 = vmatprep.mubr.msk.bf16.mxu0 %vm238_vm0, %v217_v35 }
  0x3c   : > { %2746 = vmatmul.mubr.msk.bf16.gmra.mrb[20].mxu0 %vm238_vm0, %v218_v40 }
  0x3d   : > { %2749 = vmatprep.mubr.msk.bf16.mxu0 %vm238_vm0, %v219_v41 }
  0x44   : > { %2750 = vmatmul.mubr.msk.bf16.gmra.mrb[24].mxu0 %vm238_vm0, %v220_v46 }
  0x45   : > { %2753 = vmatprep.mubr.msk.bf16.mxu0 %vm238_vm0, %v221_v47 }
  0x4c   : > { %2754 = vmatmul.mubr.msk.bf16.gmra.mrb[28].mxu0 %vm238_vm0, %v222_v50 }
  0xe7   : > { %v2727_v63 = vpop.f32.mrb[0].mxu0 }
  0xe8   : > { %v330_v0 = vadd.f32 %v2727_v63, %v3521_v62  ;;  %v321_v1 = vpop.f32.mrb[1].mxu0 }
  0xe9   : > { %v322_v2 = vadd.f32 %v3521_v62, %v321_v1  ;;  %v2728_v3 = vpop.f32.mrb[2].mxu0 }
  0xea   : > { %v450_v4 = vmul.f32 0.5, %v330_v0  ;;  %v333_v5 = vadd.f32 %v2728_v3, %v3521_v62  ;;  %v324_v6 = vpop.f32.mrb[3].mxu0 }
  0xeb   : > { %v448_v7 = vmul.f32 0.5, %v322_v2  ;;  %v325_v8 = vadd.f32 %v3521_v62, %v324_v6 }
  0xec   : > { %3062 = vtanh.f32 %v450_v4  ;;  %v451_v9 = vmul.f32 0.5, %v333_v5 }
  0xed   : > { %3064 = vtanh.f32 %v448_v7  ;;  %v449_v10 = vmul.f32 0.5, %v325_v8 }
  0xee   : > { %3066 = vtanh.f32 %v451_v9 }
  0xef   : > { %3068 = vtanh.f32 %v449_v10  ;;  %v2731_v11 = vpop.f32.mrb[4].mxu0 }
  0xf0   : > { %v346_v12 = vadd.f32 %v2731_v11, %v3521_v62  ;;  %v337_v13 = vpop.f32.mrb[5].mxu0 }
  0xf1   : > { %v338_v14 = vadd.f32 %v3521_v62, %v337_v13  ;;  %v2732_v15 = vpop.f32.mrb[6].mxu0 }
  0xf2   : > { %v454_v16 = vmul.f32 0.5, %v346_v12  ;;  %v349_v17 = vadd.f32 %v2732_v15, %v3521_v62  ;;  %v340_v18 = vpop.f32.mrb[7].mxu0 }
  0xf3   : > { %v452_v19 = vmul.f32 0.5, %v338_v14  ;;  %v341_v20 = vadd.f32 %v3521_v62, %v340_v18 }
  0xf4   : > { %3070 = vtanh.f32 %v454_v16  ;;  %v455_v21 = vmul.f32 0.5, %v349_v17 }
  0xf5   : > { %3072 = vtanh.f32 %v452_v19  ;;  %v453_v22 = vmul.f32 0.5, %v341_v20 }
  0xf6   : > { %v3063_v23 = vpop.eup %3062  ;;  %3074 = vtanh.f32 %v455_v21 }
  0xf7   : > { %v3065_v24 = vpop.eup %3064  ;;  %v514_v25 = vadd.f32 1.0, %v3063_v23  ;;  %3076 = vtanh.f32 %v453_v22  ;;  %v2735_v26 = vpop.f32.mrb[8].mxu0 }
  0xf8   : > { %v3067_v27 = vpop.eup %3066  ;;  %v362_v28 = vadd.f32 %v2735_v26, %v3521_v62  ;;  %v353_v29 = vpop.f32.mrb[9].mxu0  ;;  %v512_v30 = vadd.f32 1.0, %v3065_v24 }
  0xf9   : > { %v3069_v31 = vpop.eup %3068  ;;  %v515_v32 = vadd.f32 1.0, %v3067_v27  ;;  %v354_v33 = vadd.f32 %v3521_v62, %v353_v29  ;;  %v2736_v34 = vpop.f32.mrb[10].mxu0  ;;  %v546_v39 = vmul.f32 %v514_v25, %v450_v4 }
  0xfa   : > { %v3533_v35 = vmul.f32 0.5, %v362_v28  ;;  %v365_v36 = vadd.f32 %v2736_v34, %v3521_v62  ;;  %v356_v37 = vpop.f32.mrb[11].mxu0  ;;  %v513_v38 = vadd.f32 1.0, %v3069_v31  ;;  %v544_v44 = vmul.f32 %v512_v30, %v448_v7 }
  0xfb   : > { %v547_v40 = vmul.f32 %v515_v32, %v451_v9  ;;  %v3536_v41 = vmul.f32 0.5, %v354_v33  ;;  %v357_v42 = vadd.f32 %v3521_v62, %v356_v37 }
  0xfc   : > { %3078 = vtanh.f32 %v3533_v35  ;;  %v459_v43 = vmul.f32 0.5, %v365_v36  ;;  %v545_v45 = vmul.f32 %v513_v38, %v449_v10 }
  0xfd   : > { %3080 = vtanh.f32 %v3536_v41  ;;  %v457_v46 = vmul.f32 0.5, %v357_v42  ;;  %v577_v47 = vpack.c.bf16 %v547_v40, %v546_v39 }
  0xfe   : > { %v3071_v48 = vpop.eup %3070  ;;  %3082 = vtanh.f32 %v459_v43  ;;  %v576_v49 = vpack.c.bf16 %v545_v45, %v544_v44 }
  0xff   : > { %v3073_v50 = vpop.eup %3072  ;;  %v518_v51 = vadd.f32 1.0, %v3071_v48  ;;  %3084 = vtanh.f32 %v457_v46  ;;  %v2739_v52 = vpop.f32.mrb[12].mxu0 }
 0x100   : > { %v3075_v53 = vpop.eup %3074  ;;  %v516_v54 = vadd.f32 1.0, %v3073_v50  ;;  %v378_v55 = vadd.f32 %v2739_v52, %v3521_v62  ;;  %v369_v56 = vpop.f32.mrb[13].mxu0  ;;  %2773 = vmatprep.mubr.bf16.mxu1 %v576_v49 }
 0x101   : > { %v3077_v57 = vpop.eup %3076  ;;  %v519_v58 = vadd.f32 1.0, %v3075_v53  ;;  %v370_v59 = vadd.f32 %v3521_v62, %v369_v56  ;;  %v2740_v60 = vpop.f32.mrb[14].mxu0  ;;  %2774 = vmatmul.mubr.bf16.vlgmr.msra.gmra.mrb[0].mxu1 %v577_v47  ;;  %v550_v2 = vmul.f32 %v518_v51, %v454_v16 }
 0x102   : > { %v517_v61 = vadd.f32 1.0, %v3077_v57  ;;  %v3543_v63 = vmul.f32 0.5, %v378_v55  ;;  %v381_v0 = vadd.f32 %v2740_v60, %v3521_v62  ;;  %v372_v1 = vpop.f32.mrb[15].mxu0  ;;  %v548_v6 = vmul.f32 %v516_v54, %v452_v19 }
 0x103   : > { %v551_v3 = vmul.f32 %v519_v58, %v455_v21  ;;  %v3546_v4 = vmul.f32 0.5, %v370_v59  ;;  %v373_v5 = vadd.f32 %v3521_v62, %v372_v1 }
 0x104   : > { %v549_v7 = vmul.f32 %v517_v61, %v453_v22  ;;  %3086 = vtanh.f32 %v3543_v63  ;;  %v463_v8 = vmul.f32 0.5, %v381_v0 }
 0x105   : > { %3088 = vtanh.f32 %v3546_v4  ;;  %v461_v9 = vmul.f32 0.5, %v373_v5  ;;  %v579_v10 = vpack.c.bf16 %v551_v3, %v550_v2 }
 0x106   : > { %v3079_v11 = vpop.eup %3078  ;;  %3090 = vtanh.f32 %v463_v8  ;;  %v578_v12 = vpack.c.bf16 %v549_v7, %v548_v6 }
 0x107   : > { %v3081_v13 = vpop.eup %3080  ;;  %v522_v14 = vadd.f32 1.0, %v3079_v11  ;;  %3092 = vtanh.f32 %v461_v9  ;;  %v2743_v15 = vpop.f32.mrb[16].mxu0 }
 0x108   : > { %v3083_v16 = vpop.eup %3082  ;;  %v520_v17 = vadd.f32 1.0, %v3081_v13  ;;  %v394_v18 = vadd.f32 %v2743_v15, %v3521_v62  ;;  %v385_v19 = vpop.f32.mrb[17].mxu0  ;;  %2777 = vmatprep.mubr.bf16.mxu1 %v578_v12 }
 0x109   : > { %v3085_v20 = vpop.eup %3084  ;;  %v523_v21 = vadd.f32 1.0, %v3083_v16  ;;  %v386_v22 = vadd.f32 %v3521_v62, %v385_v19  ;;  %v2744_v23 = vpop.f32.mrb[18].mxu0  ;;  %2778 = vmatmul.mubr.bf16.gmra.mrb[4].mxu1 %v579_v10  ;;  %v554_v28 = vmul.f32 %v522_v14, %v3533_v35 }
 0x10a   : > { %v521_v24 = vadd.f32 1.0, %v3085_v20  ;;  %v3553_v25 = vmul.f32 0.5, %v394_v18  ;;  %v397_v26 = vadd.f32 %v2744_v23, %v3521_v62  ;;  %v388_v27 = vpop.f32.mrb[19].mxu0  ;;  %v552_v32 = vmul.f32 %v520_v17, %v3536_v41 }
 0x10b   : > { %v555_v29 = vmul.f32 %v523_v21, %v459_v43  ;;  %v3557_v30 = vmul.f32 0.5, %v386_v22  ;;  %v389_v31 = vadd.f32 %v3521_v62, %v388_v27 }
 0x10c   : > { %v553_v33 = vmul.f32 %v521_v24, %v457_v46  ;;  %3094 = vtanh.f32 %v3553_v25  ;;  %v467_v34 = vmul.f32 0.5, %v397_v26 }
 0x10d   : > { %3096 = vtanh.f32 %v3557_v30  ;;  %v465_v36 = vmul.f32 0.5, %v389_v31  ;;  %v581_v37 = vpack.c.bf16 %v555_v29, %v554_v28 }
 0x10e   : > { %v3087_v38 = vpop.eup %3086  ;;  %3098 = vtanh.f32 %v467_v34  ;;  %v580_v39 = vpack.c.bf16 %v553_v33, %v552_v32 }
 0x10f   : > { %v3089_v40 = vpop.eup %3088  ;;  %v526_v35 = vadd.f32 1.0, %v3087_v38  ;;  %3100 = vtanh.f32 %v465_v36  ;;  %v2747_v42 = vpop.f32.mrb[20].mxu0 }
 0x110   : > { %v3091_v43 = vpop.eup %3090  ;;  %v524_v44 = vadd.f32 1.0, %v3089_v40  ;;  %v410_v45 = vadd.f32 %v2747_v42, %v3521_v62  ;;  %v401_v41 = vpop.f32.mrb[21].mxu0  ;;  %2781 = vmatprep.mubr.bf16.mxu1 %v580_v39 }
 0x111   : > { %v3093_v46 = vpop.eup %3092  ;;  %v527_v47 = vadd.f32 1.0, %v3091_v43  ;;  %v402_v48 = vadd.f32 %v3521_v62, %v401_v41  ;;  %v2748_v49 = vpop.f32.mrb[22].mxu0  ;;  %2782 = vmatmul.mubr.bf16.gmra.mrb[8].mxu1 %v581_v37  ;;  %v558_v54 = vmul.f32 %v526_v35, %v3543_v63 }
 0x112   : > { %v525_v50 = vadd.f32 1.0, %v3093_v46  ;;  %v3565_v51 = vmul.f32 0.5, %v410_v45  ;;  %v413_v52 = vadd.f32 %v2748_v49, %v3521_v62  ;;  %v404_v53 = vpop.f32.mrb[23].mxu0  ;;  %v556_v58 = vmul.f32 %v524_v44, %v3546_v4 }
 0x113   : > { %v559_v55 = vmul.f32 %v527_v47, %v463_v8  ;;  %v3569_v56 = vmul.f32 0.5, %v402_v48  ;;  %v405_v57 = vadd.f32 %v3521_v62, %v404_v53 }
 0x114   : > { %v557_v59 = vmul.f32 %v525_v50, %v461_v9  ;;  %3102 = vtanh.f32 %v3565_v51  ;;  %v471_v60 = vmul.f32 0.5, %v413_v52 }
 0x115   : > { %3104 = vtanh.f32 %v3569_v56  ;;  %v469_v61 = vmul.f32 0.5, %v405_v57  ;;  %v583_v0 = vpack.c.bf16 %v559_v55, %v558_v54 }
 0x116   : > { %v3095_v1 = vpop.eup %3094  ;;  %3106 = vtanh.f32 %v471_v60  ;;  %v582_v2 = vpack.c.bf16 %v557_v59, %v556_v58 }
 0x117   : > { %v3097_v3 = vpop.eup %3096  ;;  %v530_v63 = vadd.f32 1.0, %v3095_v1  ;;  %3108 = vtanh.f32 %v469_v61  ;;  %v2751_v5 = vpop.f32.mrb[24].mxu0 }
 0x118   : > { %v3099_v6 = vpop.eup %3098  ;;  %v528_v7 = vadd.f32 1.0, %v3097_v3  ;;  %v426_v8 = vadd.f32 %v2751_v5, %v3521_v62  ;;  %v417_v4 = vpop.f32.mrb[25].mxu0  ;;  %2785 = vmatprep.mubr.bf16.mxu1 %v582_v2 }
 0x119   : > { %v3101_v9 = vpop.eup %3100  ;;  %v531_v10 = vadd.f32 1.0, %v3099_v6  ;;  %v418_v11 = vadd.f32 %v3521_v62, %v417_v4  ;;  %v2752_v12 = vpop.f32.mrb[26].mxu0  ;;  %2786 = vmatmul.mubr.bf16.gmra.mrb[12].mxu1 %v583_v0  ;;  %v562_v17 = vmul.f32 %v530_v63, %v3553_v25 }
 0x11a   : > { %v529_v13 = vadd.f32 1.0, %v3101_v9  ;;  %v474_v14 = vmul.f32 0.5, %v426_v8  ;;  %v429_v15 = vadd.f32 %v2752_v12, %v3521_v62  ;;  %v420_v16 = vpop.f32.mrb[27].mxu0  ;;  %v560_v21 = vmul.f32 %v528_v7, %v3557_v30 }
 0x11b   : > { %v563_v18 = vmul.f32 %v531_v10, %v467_v34  ;;  %v472_v19 = vmul.f32 0.5, %v418_v11  ;;  %v421_v20 = vadd.f32 %v3521_v62, %v420_v16 }
 0x11c   : > { %v561_v22 = vmul.f32 %v529_v13, %v465_v36  ;;  %3110 = vtanh.f32 %v474_v14  ;;  %v475_v23 = vmul.f32 0.5, %v429_v15 }
 0x11d   : > { %3112 = vtanh.f32 %v472_v19  ;;  %v473_v24 = vmul.f32 0.5, %v421_v20  ;;  %v585_v26 = vpack.c.bf16 %v563_v18, %v562_v17  ;;  %v3035_v17 = vld [vmem:[%s4096_s1 + $0xa8] sm:$0xff]   ;;  %v3036_v18 = vld [vmem:[%s4096_s1 + $0xb0] sm:$0xff]   ;;  %v3038_v20 = vld [vmem:[%s4096_s1 + $0xc0] sm:$0xff]  }
 0x11e   : > { %v3103_v27 = vpop.eup %3102  ;;  %3114 = vtanh.f32 %v475_v23  ;;  %v584_v28 = vpack.c.bf16 %v561_v22, %v560_v21  ;;  %2815 = vmatprep.subr.bf16.mxu0 %v3035_v17  ;;  %v3039_v21 = vld [vmem:[%s4096_s1 + $0xc8] sm:$0xff]   ;;  %2853 = vmatprep.subr.bf16.mxu1 %v3038_v20  ;;  %v3040_v22 = vld [vmem:[%s4096_s1 + $0xd0] sm:$0xff]  }
 0x11f   : > { %v3105_v29 = vpop.eup %3104  ;;  %v534_v31 = vadd.f32 1.0, %v3103_v27  ;;  %3116 = vtanh.f32 %v473_v24  ;;  %v2755_v32 = vpop.f32.mrb[28].mxu0  ;;  %2816 = vmatpush3.bf16.msra.mxu0 %v3035_v17  ;;  %2854 = vmatpush3.bf16.msra.mxu1 %v3038_v20 }
 0x120   : > { %v3107_v25 = vpop.eup %3106  ;;  %v532_v33 = vadd.f32 1.0, %v3105_v29  ;;  %v442_v34 = vadd.f32 %v2755_v32, %v3521_v62  ;;  %v433_v37 = vpop.f32.mrb[29].mxu0  ;;  %2789 = vmatprep.mubr.bf16.mxu1 %v584_v28  ;;  %2817 = vmatprep.subr.bf16.mxu0 %v3036_v18 }
 0x121   : > { %v3109_v30 = vpop.eup %3108  ;;  %v535_v36 = vadd.f32 1.0, %v3107_v25  ;;  %v434_v38 = vadd.f32 %v3521_v62, %v433_v37  ;;  %v2756_v39 = vpop.f32.mrb[30].mxu0  ;;  %2790 = vmatmul.mubr.bf16.gmra.mrb[16].mxu1 %v585_v26  ;;  %v566_v44 = vmul.f32 %v534_v31, %v3565_v51  ;;  %2855 = vmatprep.subr.bf16.mxu1 %v3039_v21  ;;  %v3614_v26 = vld [vmem:[%s4097_s2 + $0x1] ss:$0 sm:$0xff] }
 0x122   : > { %v533_v40 = vadd.f32 1.0, %v3109_v30  ;;  %v478_v35 = vmul.f32 0.5, %v442_v34  ;;  %v445_v42 = vadd.f32 %v2756_v39, %v3521_v62  ;;  %v436_v43 = vpop.f32.mrb[31].mxu0  ;;  %v564_v47 = vmul.f32 %v532_v33, %v3569_v56 }
 0x123   : > { %v567_v45 = vmul.f32 %v535_v36, %v471_v60  ;;  %v476_v41 = vmul.f32 0.5, %v434_v38  ;;  %v437_v46 = vadd.f32 %v3521_v62, %v436_v43  ;;  %2818 = vmatpush3.bf16.msra.mxu0 %v3036_v18  ;;  %2856 = vmatpush3.bf16.msra.mxu1 %v3039_v21 }
 0x124   : > { %v565_v48 = vmul.f32 %v533_v40, %v469_v61  ;;  %3118 = vtanh.f32 %v478_v35  ;;  %v479_v49 = vmul.f32 0.5, %v445_v42  ;;  %2857 = vmatprep.subr.bf16.mxu1 %v3040_v22 }
 0x125   : > { %3120 = vtanh.f32 %v476_v41  ;;  %v477_v50 = vmul.f32 0.5, %v437_v46  ;;  %v587_v52 = vpack.c.bf16 %v567_v45, %v566_v44 }
 0x126   : > { %v3111_v53 = vpop.eup %3110  ;;  %3122 = vtanh.f32 %v479_v49  ;;  %v586_v54 = vpack.c.bf16 %v565_v48, %v564_v47 }
 0x127   : > { %v3113_v55 = vpop.eup %3112  ;;  %v538_v57 = vadd.f32 1.0, %v3111_v53  ;;  %3124 = vtanh.f32 %v477_v50  ;;  %2858 = vmatpush3.bf16.msra.mxu1 %v3040_v22 }
 0x128   : > { %v3115_v58 = vpop.eup %3114  ;;  %v536_v51 = vadd.f32 1.0, %v3113_v55  ;;  %2793 = vmatprep.mubr.bf16.mxu1 %v586_v54 }
 0x129   : > { %v3117_v59 = vpop.eup %3116  ;;  %v539_v60 = vadd.f32 1.0, %v3115_v58  ;;  %2794 = vmatmul.mubr.bf16.gmra.mrb[20].mxu1 %v587_v52  ;;  %v570_v56 = vmul.f32 %v538_v57, %v474_v14 }
 0x12a   : > { %v537_v62 = vadd.f32 1.0, %v3117_v59  ;;  %v568_v0 = vmul.f32 %v536_v51, %v472_v19  ;;  %v3037_v19 = vld [vmem:[%s4096_s1 + $0xb8] sm:$0xff]  }
 0x12b   : > { %v571_v61 = vmul.f32 %v539_v60, %v475_v23  ;;  %2819 = vmatprep.subr.bf16.mxu0 %v3037_v19  ;;  %v3041_v23 = vld [vmem:[%s4096_s1 + $0xd8] sm:$0xff]  }
 0x12c   : > { %v569_v1 = vmul.f32 %v537_v62, %v473_v24  ;;  %2820 = vmatpush3.bf16.msra.mxu0 %v3037_v19  ;;  %2859 = vmatprep.subr.bf16.mxu1 %v3041_v23  ;;  %v3042_v24 = vld [vmem:[%s4096_s1 + $0xe0] sm:$0xff]  }
 0x12d   : > { %v589_v2 = vpack.c.bf16 %v571_v61, %v570_v56  ;;  %2860 = vmatpush3.bf16.msra.mxu1 %v3041_v23 }
 0x12e   : > { %v3119_v3 = vpop.eup %3118  ;;  %v588_v63 = vpack.c.bf16 %v569_v1, %v568_v0  ;;  %2861 = vmatprep.subr.bf16.mxu1 %v3042_v24 }
 0x12f   : > { %v3121_v5 = vpop.eup %3120  ;;  %v542_v6 = vadd.f32 1.0, %v3119_v3 }
 0x130   : > { %v3123_v7 = vpop.eup %3122  ;;  %v540_v8 = vadd.f32 1.0, %v3121_v5  ;;  %2797 = vmatprep.mubr.bf16.mxu1 %v588_v63 }
 0x131   : > { %v3125_v4 = vpop.eup %3124  ;;  %v543_v9 = vadd.f32 1.0, %v3123_v7  ;;  %2798 = vmatmul.mubr.bf16.gmra.mrb[24].mxu1 %v589_v2  ;;  %v574_v11 = vmul.f32 %v542_v6, %v478_v35 }
 0x132   : > { %v541_v10 = vadd.f32 1.0, %v3125_v4  ;;  %v572_v13 = vmul.f32 %v540_v8, %v476_v41  ;;  %2862 = vmatpush3.bf16.msra.mxu1 %v3042_v24 }
 0x133   : > { %v575_v12 = vmul.f32 %v543_v9, %v479_v49 }
 0x134   : > { %v573_v15 = vmul.f32 %v541_v10, %v477_v50 }
 0x135   : > { %v591_v14 = vpack.c.bf16 %v575_v12, %v574_v11 }
 0x136   : > { %v590_v16 = vpack.c.bf16 %v573_v15, %v572_v13 }
 0x138   : > { %2801 = vmatprep.mubr.bf16.mxu1 %v590_v16 }
 0x139   : > { %2802 = vmatmul.mubr.bf16.gmra.mrb[28].mxu1 %v591_v14 }
 0x1d4   : > { %v2775_v27 = vpop.f32.mrb[0].mxu1 }
 0x1d5   : > { %v708_v28 = vadd.f32 %v2775_v27, %v3614_v26  ;;  %v699_v29 = vpop.f32.mrb[1].mxu1 }
 0x1d6   : > { %v700_v31 = vadd.f32 %v3614_v26, %v699_v29  ;;  %v2776_v32 = vpop.f32.mrb[2].mxu1 }
 0x1d7   : > { %v828_v25 = vmul.f32 0.5, %v708_v28  ;;  %v711_v33 = vadd.f32 %v2776_v32, %v3614_v26  ;;  %v702_v34 = vpop.f32.mrb[3].mxu1 }
 0x1d8   : > { %v826_v37 = vmul.f32 0.5, %v700_v31  ;;  %v703_v30 = vadd.f32 %v3614_v26, %v702_v34 }
 0x1d9   : > { %3126 = vtanh.f32 %v828_v25  ;;  %v829_v36 = vmul.f32 0.5, %v711_v33 }
 0x1da   : > { %3128 = vtanh.f32 %v826_v37  ;;  %v827_v38 = vmul.f32 0.5, %v703_v30 }
 0x1db   : > { %3130 = vtanh.f32 %v829_v36 }
 0x1dc   : > { %3132 = vtanh.f32 %v827_v38  ;;  %v2779_v39 = vpop.f32.mrb[4].mxu1 }
 0x1dd   : > { %v724_v40 = vadd.f32 %v2779_v39, %v3614_v26  ;;  %v715_v35 = vpop.f32.mrb[5].mxu1 }
 0x1de   : > { %v716_v42 = vadd.f32 %v3614_v26, %v715_v35  ;;  %v2780_v43 = vpop.f32.mrb[6].mxu1 }
 0x1df   : > { %v832_v44 = vmul.f32 0.5, %v724_v40  ;;  %v727_v45 = vadd.f32 %v2780_v43, %v3614_v26  ;;  %v718_v41 = vpop.f32.mrb[7].mxu1 }
 0x1e0   : > { %v830_v46 = vmul.f32 0.5, %v716_v42  ;;  %v719_v47 = vadd.f32 %v3614_v26, %v718_v41 }
 0x1e1   : > { %3134 = vtanh.f32 %v832_v44  ;;  %v833_v48 = vmul.f32 0.5, %v727_v45 }
 0x1e2   : > { %3136 = vtanh.f32 %v830_v46  ;;  %v831_v49 = vmul.f32 0.5, %v719_v47 }
 0x1e3   : > { %v3127_v50 = vpop.eup %3126  ;;  %3138 = vtanh.f32 %v833_v48 }
 0x1e4   : > { %v3129_v52 = vpop.eup %3128  ;;  %v892_v53 = vadd.f32 1.0, %v3127_v50  ;;  %3140 = vtanh.f32 %v831_v49  ;;  %v2783_v54 = vpop.f32.mrb[8].mxu1 }
 0x1e5   : > { %v3131_v55 = vpop.eup %3130  ;;  %v890_v57 = vadd.f32 1.0, %v3129_v52  ;;  %v740_v58 = vadd.f32 %v2783_v54, %v3614_v26  ;;  %v731_v51 = vpop.f32.mrb[9].mxu1 }
 0x1e6   : > { %v3133_v59 = vpop.eup %3132  ;;  %v893_v60 = vadd.f32 1.0, %v3131_v55  ;;  %v732_v62 = vadd.f32 %v3614_v26, %v731_v51  ;;  %v2784_v56 = vpop.f32.mrb[10].mxu1  ;;  %v924_v3 = vmul.f32 %v892_v53, %v828_v25 }
 0x1e7   : > { %v891_v61 = vadd.f32 1.0, %v3133_v59  ;;  %v3626_v0 = vmul.f32 0.5, %v740_v58  ;;  %v743_v1 = vadd.f32 %v2784_v56, %v3614_v26  ;;  %v734_v2 = vpop.f32.mrb[11].mxu1  ;;  %v922_v7 = vmul.f32 %v890_v57, %v826_v37 }
 0x1e8   : > { %v925_v63 = vmul.f32 %v893_v60, %v829_v36  ;;  %v3629_v5 = vmul.f32 0.5, %v732_v62  ;;  %v735_v6 = vadd.f32 %v3614_v26, %v734_v2 }
 0x1e9   : > { %v923_v8 = vmul.f32 %v891_v61, %v827_v38  ;;  %3142 = vtanh.f32 %v3626_v0  ;;  %v837_v4 = vmul.f32 0.5, %v743_v1 }
 0x1ea   : > { %v955_v9 = vpack.c.bf16 %v925_v63, %v924_v3  ;;  %3144 = vtanh.f32 %v3629_v5  ;;  %v835_v10 = vmul.f32 0.5, %v735_v6 }
 0x1eb   : > { %v3135_v11 = vpop.eup %3134  ;;  %3146 = vtanh.f32 %v837_v4  ;;  %v954_v12 = vpack.c.bf16 %v923_v8, %v922_v7 }
 0x1ec   : > { %v3137_v13 = vpop.eup %3136  ;;  %v896_v15 = vadd.f32 1.0, %v3135_v11  ;;  %3148 = vtanh.f32 %v835_v10  ;;  %v2787_v14 = vpop.f32.mrb[12].mxu1 }
 0x1ed   : > { %v3139_v16 = vpop.eup %3138  ;;  %v894_v17 = vadd.f32 1.0, %v3137_v13  ;;  %v756_v18 = vadd.f32 %v2787_v14, %v3614_v26  ;;  %v747_v19 = vpop.f32.mrb[13].mxu1  ;;  %2821 = vmatprep.mubr.bf16.mxu0 %v954_v12 }
 0x1ee   : > { %v3141_v20 = vpop.eup %3140  ;;  %v897_v21 = vadd.f32 1.0, %v3139_v16  ;;  %v748_v22 = vadd.f32 %v3614_v26, %v747_v19  ;;  %v2788_v23 = vpop.f32.mrb[14].mxu1  ;;  %2822 = vmatmul.mubr.bf16.vlgmr.msra.gmra.mrb[32].mxu0 %v955_v9  ;;  %v928_v31 = vmul.f32 %v896_v15, %v832_v44 }
 0x1ef   : > { %v895_v24 = vadd.f32 1.0, %v3141_v20  ;;  %v3636_v27 = vmul.f32 0.5, %v756_v18  ;;  %v759_v28 = vadd.f32 %v2788_v23, %v3614_v26  ;;  %v750_v29 = vpop.f32.mrb[15].mxu1  ;;  %v926_v34 = vmul.f32 %v894_v17, %v830_v46 }
 0x1f0   : > { %v929_v32 = vmul.f32 %v897_v21, %v833_v48  ;;  %v3639_v25 = vmul.f32 0.5, %v748_v22  ;;  %v751_v33 = vadd.f32 %v3614_v26, %v750_v29 }
 0x1f1   : > { %v927_v37 = vmul.f32 %v895_v24, %v831_v49  ;;  %3150 = vtanh.f32 %v3636_v27  ;;  %v841_v30 = vmul.f32 0.5, %v759_v28 }
 0x1f2   : > { %3152 = vtanh.f32 %v3639_v25  ;;  %v839_v36 = vmul.f32 0.5, %v751_v33  ;;  %v957_v38 = vpack.c.bf16 %v929_v32, %v928_v31 }
 0x1f3   : > { %v3143_v39 = vpop.eup %3142  ;;  %3154 = vtanh.f32 %v841_v30  ;;  %v956_v40 = vpack.c.bf16 %v927_v37, %v926_v34 }
 0x1f4   : > { %v3145_v35 = vpop.eup %3144  ;;  %v900_v42 = vadd.f32 1.0, %v3143_v39  ;;  %3156 = vtanh.f32 %v839_v36  ;;  %v2791_v43 = vpop.f32.mrb[16].mxu1 }
 0x1f5   : > { %v3147_v44 = vpop.eup %3146  ;;  %v898_v45 = vadd.f32 1.0, %v3145_v35  ;;  %v772_v41 = vadd.f32 %v2791_v43, %v3614_v26  ;;  %v763_v46 = vpop.f32.mrb[17].mxu1  ;;  %2825 = vmatprep.mubr.bf16.mxu0 %v956_v40 }
 0x1f6   : > { %v3149_v47 = vpop.eup %3148  ;;  %v901_v48 = vadd.f32 1.0, %v3147_v44  ;;  %v764_v49 = vadd.f32 %v3614_v26, %v763_v46  ;;  %v2792_v50 = vpop.f32.mrb[18].mxu1  ;;  %2826 = vmatmul.mubr.bf16.gmra.mrb[36].mxu0 %v957_v38  ;;  %v932_v57 = vmul.f32 %v900_v42, %v3626_v0 }
 0x1f7   : > { %v899_v52 = vadd.f32 1.0, %v3149_v47  ;;  %v3646_v53 = vmul.f32 0.5, %v772_v41  ;;  %v775_v54 = vadd.f32 %v2792_v50, %v3614_v26  ;;  %v766_v55 = vpop.f32.mrb[19].mxu1  ;;  %v930_v60 = vmul.f32 %v898_v45, %v3629_v5 }
 0x1f8   : > { %v933_v58 = vmul.f32 %v901_v48, %v837_v4  ;;  %v3650_v51 = vmul.f32 0.5, %v764_v49  ;;  %v767_v59 = vadd.f32 %v3614_v26, %v766_v55 }
 0x1f9   : > { %v931_v62 = vmul.f32 %v899_v52, %v835_v10  ;;  %3158 = vtanh.f32 %v3646_v53  ;;  %v845_v56 = vmul.f32 0.5, %v775_v54 }
 0x1fa   : > { %3160 = vtanh.f32 %v3650_v51  ;;  %v843_v61 = vmul.f32 0.5, %v767_v59  ;;  %v959_v1 = vpack.c.bf16 %v933_v58, %v932_v57 }
 0x1fb   : > { %v3151_v2 = vpop.eup %3150  ;;  %3162 = vtanh.f32 %v845_v56  ;;  %v958_v3 = vpack.c.bf16 %v931_v62, %v930_v60 }
 0x1fc   : > { %v3153_v63 = vpop.eup %3152  ;;  %v904_v0 = vadd.f32 1.0, %v3151_v2  ;;  %3164 = vtanh.f32 %v843_v61  ;;  %v2795_v6 = vpop.f32.mrb[20].mxu1 }
 0x1fd   : > { %v3155_v7 = vpop.eup %3154  ;;  %v902_v8 = vadd.f32 1.0, %v3153_v63  ;;  %v788_v4 = vadd.f32 %v2795_v6, %v3614_v26  ;;  %v779_v5 = vpop.f32.mrb[21].mxu1  ;;  %2829 = vmatprep.mubr.bf16.mxu0 %v958_v3 }
 0x1fe   : > { %v3157_v9 = vpop.eup %3156  ;;  %v905_v10 = vadd.f32 1.0, %v3155_v7  ;;  %v780_v11 = vadd.f32 %v3614_v26, %v779_v5  ;;  %v2796_v12 = vpop.f32.mrb[22].mxu1  ;;  %2830 = vmatmul.mubr.bf16.gmra.mrb[40].mxu0 %v959_v1  ;;  %v936_v17 = vmul.f32 %v904_v0, %v3636_v27 }
 0x1ff   : > { %v903_v13 = vadd.f32 1.0, %v3157_v9  ;;  %v3658_v15 = vmul.f32 0.5, %v788_v4  ;;  %v791_v14 = vadd.f32 %v2796_v12, %v3614_v26  ;;  %v782_v16 = vpop.f32.mrb[23].mxu1  ;;  %v934_v21 = vmul.f32 %v902_v8, %v3639_v25 }
 0x200   : > { %v937_v18 = vmul.f32 %v905_v10, %v841_v30  ;;  %v3662_v19 = vmul.f32 0.5, %v780_v11  ;;  %v783_v20 = vadd.f32 %v3614_v26, %v782_v16 }
 0x201   : > { %v935_v22 = vmul.f32 %v903_v13, %v839_v36  ;;  %3166 = vtanh.f32 %v3658_v15  ;;  %v849_v23 = vmul.f32 0.5, %v791_v14 }
 0x202   : > { %3168 = vtanh.f32 %v3662_v19  ;;  %v847_v24 = vmul.f32 0.5, %v783_v20  ;;  %v961_v28 = vpack.c.bf16 %v937_v18, %v936_v17 }
 0x203   : > { %v3159_v29 = vpop.eup %3158  ;;  %3170 = vtanh.f32 %v849_v23  ;;  %v960_v31 = vpack.c.bf16 %v935_v22, %v934_v21 }
 0x204   : > { %v3161_v32 = vpop.eup %3160  ;;  %v908_v27 = vadd.f32 1.0, %v3159_v29  ;;  %3172 = vtanh.f32 %v847_v24  ;;  %v2799_v33 = vpop.f32.mrb[24].mxu1 }
 0x205   : > { %v3163_v34 = vpop.eup %3162  ;;  %v906_v37 = vadd.f32 1.0, %v3161_v32  ;;  %v804_v30 = vadd.f32 %v2799_v33, %v3614_v26  ;;  %v795_v25 = vpop.f32.mrb[25].mxu1  ;;  %2833 = vmatprep.mubr.bf16.mxu0 %v960_v31 }
 0x206   : > { %v3165_v36 = vpop.eup %3164  ;;  %v909_v38 = vadd.f32 1.0, %v3163_v34  ;;  %v796_v39 = vadd.f32 %v3614_v26, %v795_v25  ;;  %v2800_v40 = vpop.f32.mrb[26].mxu1  ;;  %2834 = vmatmul.mubr.bf16.gmra.mrb[44].mxu0 %v961_v28  ;;  %v940_v45 = vmul.f32 %v908_v27, %v3646_v53 }
 0x207   : > { %v907_v35 = vadd.f32 1.0, %v3165_v36  ;;  %v852_v42 = vmul.f32 0.5, %v804_v30  ;;  %v807_v43 = vadd.f32 %v2800_v40, %v3614_v26  ;;  %v798_v44 = vpop.f32.mrb[27].mxu1  ;;  %v938_v48 = vmul.f32 %v906_v37, %v3650_v51 }
 0x208   : > { %v941_v41 = vmul.f32 %v909_v38, %v845_v56  ;;  %v850_v46 = vmul.f32 0.5, %v796_v39  ;;  %v799_v47 = vadd.f32 %v3614_v26, %v798_v44 }
 0x209   : > { %v939_v49 = vmul.f32 %v907_v35, %v843_v61  ;;  %3174 = vtanh.f32 %v852_v42  ;;  %v853_v50 = vmul.f32 0.5, %v807_v43 }
 0x20a   : > { %3176 = vtanh.f32 %v850_v46  ;;  %v851_v52 = vmul.f32 0.5, %v799_v47  ;;  %v963_v54 = vpack.c.bf16 %v941_v41, %v940_v45  ;;  %v3043_v45 = vld [vmem:[%s4096_s1 + $0xe8] sm:$0xff]   ;;  %v3044_v41 = vld [vmem:[%s4096_s1 + $0xf0] sm:$0xff]   ;;  %v3046_v47 = vld [vmem:[%s4096_s1 + $0x100] sm:$0xff]  }
 0x20b   : > { %v3167_v55 = vpop.eup %3166  ;;  %3178 = vtanh.f32 %v853_v50  ;;  %v962_v57 = vpack.c.bf16 %v939_v49, %v938_v48  ;;  %2863 = vmatprep.subr.bf16.mxu1 %v3043_v45  ;;  %v3047_v48 = vld [vmem:[%s4096_s1 + $0x108] sm:$0xff]   ;;  %2901 = vmatprep.subr.bf16.mxu0 %v3046_v47  ;;  %v3048_v49 = vld [vmem:[%s4096_s1 + $0x110] sm:$0xff]  }
 0x20c   : > { %v3169_v58 = vpop.eup %3168  ;;  %v912_v59 = vadd.f32 1.0, %v3167_v55  ;;  %3180 = vtanh.f32 %v851_v52  ;;  %v2803_v60 = vpop.f32.mrb[28].mxu1  ;;  %2864 = vmatpush3.bf16.msra.mxu1 %v3043_v45  ;;  %2902 = vmatpush3.bf16.msra.mxu0 %v3046_v47 }
 0x20d   : > { %v3171_v53 = vpop.eup %3170  ;;  %v910_v62 = vadd.f32 1.0, %v3169_v58  ;;  %v820_v56 = vadd.f32 %v2803_v60, %v3614_v26  ;;  %v811_v1 = vpop.f32.mrb[29].mxu1  ;;  %2837 = vmatprep.mubr.bf16.mxu0 %v962_v57  ;;  %2865 = vmatprep.subr.bf16.mxu1 %v3044_v41 }
 0x20e   : > { %v3173_v51 = vpop.eup %3172  ;;  %v913_v61 = vadd.f32 1.0, %v3171_v53  ;;  %v812_v2 = vadd.f32 %v3614_v26, %v811_v1  ;;  %v2804_v3 = vpop.f32.mrb[30].mxu1  ;;  %2838 = vmatmul.mubr.bf16.gmra.mrb[48].mxu0 %v963_v54  ;;  %v944_v8 = vmul.f32 %v912_v59, %v3658_v15  ;;  %2903 = vmatprep.subr.bf16.mxu0 %v3047_v48  ;;  %v3707_v54 = vld [vmem:[%s4097_s2 + $0x2] ss:$0 sm:$0xff] }
 0x20f   : > { %v911_v63 = vadd.f32 1.0, %v3173_v51  ;;  %v856_v0 = vmul.f32 0.5, %v820_v56  ;;  %v823_v6 = vadd.f32 %v2804_v3, %v3614_v26  ;;  %v814_v7 = vpop.f32.mrb[31].mxu1  ;;  %v942_v10 = vmul.f32 %v910_v62, %v3662_v19 }
 0x210   : > { %v945_v4 = vmul.f32 %v913_v61, %v849_v23  ;;  %v854_v5 = vmul.f32 0.5, %v812_v2  ;;  %v815_v9 = vadd.f32 %v3614_v26, %v814_v7  ;;  %2866 = vmatpush3.bf16.msra.mxu1 %v3044_v41  ;;  %2904 = vmatpush3.bf16.msra.mxu0 %v3047_v48 }
 0x211   : > { %v943_v11 = vmul.f32 %v911_v63, %v847_v24  ;;  %3182 = vtanh.f32 %v856_v0  ;;  %v857_v12 = vmul.f32 0.5, %v823_v6  ;;  %2905 = vmatprep.subr.bf16.mxu0 %v3048_v49 }
 0x212   : > { %3184 = vtanh.f32 %v854_v5  ;;  %v855_v13 = vmul.f32 0.5, %v815_v9  ;;  %v965_v14 = vpack.c.bf16 %v945_v4, %v944_v8 }
 0x213   : > { %v3175_v16 = vpop.eup %3174  ;;  %3186 = vtanh.f32 %v857_v12  ;;  %v964_v17 = vpack.c.bf16 %v943_v11, %v942_v10 }
 0x214   : > { %v3177_v18 = vpop.eup %3176  ;;  %v916_v20 = vadd.f32 1.0, %v3175_v16  ;;  %3188 = vtanh.f32 %v855_v13  ;;  %2906 = vmatpush3.bf16.msra.mxu0 %v3048_v49 }
 0x215   : > { %v3179_v21 = vpop.eup %3178  ;;  %v914_v15 = vadd.f32 1.0, %v3177_v18  ;;  %2841 = vmatprep.mubr.bf16.mxu0 %v964_v17 }
 0x216   : > { %v3181_v22 = vpop.eup %3180  ;;  %v917_v23 = vadd.f32 1.0, %v3179_v21  ;;  %2842 = vmatmul.mubr.bf16.gmra.mrb[52].mxu0 %v965_v14  ;;  %v948_v19 = vmul.f32 %v916_v20, %v852_v42 }
 0x217   : > { %v915_v26 = vadd.f32 1.0, %v3181_v22  ;;  %v946_v28 = vmul.f32 %v914_v15, %v850_v46  ;;  %v3045_v46 = vld [vmem:[%s4096_s1 + $0xf8] sm:$0xff]  }
 0x218   : > { %v949_v24 = vmul.f32 %v917_v23, %v853_v50  ;;  %2867 = vmatprep.subr.bf16.mxu1 %v3045_v46  ;;  %v3049_v50 = vld [vmem:[%s4096_s1 + $0x118] sm:$0xff]  }
 0x219   : > { %v947_v29 = vmul.f32 %v915_v26, %v851_v52  ;;  %2868 = vmatpush3.bf16.msra.mxu1 %v3045_v46  ;;  %2907 = vmatprep.subr.bf16.mxu0 %v3049_v50  ;;  %v3050_v52 = vld [vmem:[%s4096_s1 + $0x120] sm:$0xff]  }
 0x21a   : > { %v967_v31 = vpack.c.bf16 %v949_v24, %v948_v19  ;;  %2908 = vmatpush3.bf16.msra.mxu0 %v3049_v50 }
 0x21b   : > { %v3183_v32 = vpop.eup %3182  ;;  %v966_v27 = vpack.c.bf16 %v947_v29, %v946_v28  ;;  %2909 = vmatprep.subr.bf16.mxu0 %v3050_v52 }
 0x21c   : > { %v3185_v33 = vpop.eup %3184  ;;  %v920_v34 = vadd.f32 1.0, %v3183_v32 }
 0x21d   : > { %v3187_v37 = vpop.eup %3186  ;;  %v918_v30 = vadd.f32 1.0, %v3185_v33  ;;  %2845 = vmatprep.mubr.bf16.mxu0 %v966_v27 }
 0x21e   : > { %v3189_v25 = vpop.eup %3188  ;;  %v921_v36 = vadd.f32 1.0, %v3187_v37  ;;  %2846 = vmatmul.mubr.bf16.gmra.mrb[56].mxu0 %v967_v31  ;;  %v952_v39 = vmul.f32 %v920_v34, %v856_v0 }
 0x21f   : > { %v919_v38 = vadd.f32 1.0, %v3189_v25  ;;  %v950_v35 = vmul.f32 %v918_v30, %v854_v5  ;;  %2910 = vmatpush3.bf16.msra.mxu0 %v3050_v52 }
 0x220   : > { %v953_v40 = vmul.f32 %v921_v36, %v857_v12 }
 0x221   : > { %v951_v43 = vmul.f32 %v919_v38, %v855_v13 }
 0x222   : > { %v969_v42 = vpack.c.bf16 %v953_v40, %v952_v39 }
 0x223   : > { %v968_v44 = vpack.c.bf16 %v951_v43, %v950_v35 }
 0x225   : > { %2849 = vmatprep.mubr.bf16.mxu0 %v968_v44 }
 0x226   : > { %2850 = vmatmul.mubr.bf16.gmra.mrb[60].mxu0 %v969_v42 }
 0x2c1   : > { %v2823_v55 = vpop.f32.mrb[32].mxu0 }
 0x2c2   : > { %v1086_v57 = vadd.f32 %v2823_v55, %v3707_v54  ;;  %v1077_v58 = vpop.f32.mrb[33].mxu0 }
 0x2c3   : > { %v1078_v59 = vadd.f32 %v3707_v54, %v1077_v58  ;;  %v2824_v60 = vpop.f32.mrb[34].mxu0 }
 0x2c4   : > { %v1206_v53 = vmul.f32 0.5, %v1086_v57  ;;  %v1089_v62 = vadd.f32 %v2824_v60, %v3707_v54  ;;  %v1080_v56 = vpop.f32.mrb[35].mxu0 }
 0x2c5   : > { %v1204_v1 = vmul.f32 0.5, %v1078_v59  ;;  %v1081_v51 = vadd.f32 %v3707_v54, %v1080_v56 }
 0x2c6   : > { %3190 = vtanh.f32 %v1206_v53  ;;  %v1207_v61 = vmul.f32 0.5, %v1089_v62 }
 0x2c7   : > { %3192 = vtanh.f32 %v1204_v1  ;;  %v1205_v2 = vmul.f32 0.5, %v1081_v51 }
 0x2c8   : > { %3194 = vtanh.f32 %v1207_v61 }
 0x2c9   : > { %3196 = vtanh.f32 %v1205_v2  ;;  %v2827_v3 = vpop.f32.mrb[36].mxu0 }
 0x2ca   : > { %v1102_v63 = vadd.f32 %v2827_v3, %v3707_v54  ;;  %v1093_v0 = vpop.f32.mrb[37].mxu0 }
 0x2cb   : > { %v1094_v6 = vadd.f32 %v3707_v54, %v1093_v0  ;;  %v2828_v7 = vpop.f32.mrb[38].mxu0 }
 0x2cc   : > { %v1210_v8 = vmul.f32 0.5, %v1102_v63  ;;  %v1105_v4 = vadd.f32 %v2828_v7, %v3707_v54  ;;  %v1096_v5 = vpop.f32.mrb[39].mxu0 }
 0x2cd   : > { %v1208_v9 = vmul.f32 0.5, %v1094_v6  ;;  %v1097_v10 = vadd.f32 %v3707_v54, %v1096_v5 }
 0x2ce   : > { %3198 = vtanh.f32 %v1210_v8  ;;  %v1211_v11 = vmul.f32 0.5, %v1105_v4 }
 0x2cf   : > { %3200 = vtanh.f32 %v1208_v9  ;;  %v1209_v12 = vmul.f32 0.5, %v1097_v10 }
 0x2d0   : > { %v3191_v13 = vpop.eup %3190  ;;  %3202 = vtanh.f32 %v1211_v11 }
 0x2d1   : > { %v3193_v14 = vpop.eup %3192  ;;  %v1270_v16 = vadd.f32 1.0, %v3191_v13  ;;  %3204 = vtanh.f32 %v1209_v12  ;;  %v2831_v17 = vpop.f32.mrb[40].mxu0 }
 0x2d2   : > { %v3195_v18 = vpop.eup %3194  ;;  %v1268_v20 = vadd.f32 1.0, %v3193_v14  ;;  %v1118_v21 = vadd.f32 %v2831_v17, %v3707_v54  ;;  %v1109_v15 = vpop.f32.mrb[41].mxu0 }
 0x2d3   : > { %v3197_v22 = vpop.eup %3196  ;;  %v1271_v23 = vadd.f32 1.0, %v3195_v18  ;;  %v1110_v26 = vadd.f32 %v3707_v54, %v1109_v15  ;;  %v2832_v19 = vpop.f32.mrb[42].mxu0  ;;  %v1302_v32 = vmul.f32 %v1270_v16, %v1206_v53 }
 0x2d4   : > { %v1269_v24 = vadd.f32 1.0, %v3197_v22  ;;  %v3719_v28 = vmul.f32 0.5, %v1118_v21  ;;  %v1121_v29 = vadd.f32 %v2832_v19, %v3707_v54  ;;  %v1112_v31 = vpop.f32.mrb[43].mxu0  ;;  %v1300_v37 = vmul.f32 %v1268_v20, %v1204_v1 }
 0x2d5   : > { %v1303_v27 = vmul.f32 %v1271_v23, %v1207_v61  ;;  %v3722_v33 = vmul.f32 0.5, %v1110_v26  ;;  %v1113_v34 = vadd.f32 %v3707_v54, %v1112_v31 }
 0x2d6   : > { %v1301_v30 = vmul.f32 %v1269_v24, %v1205_v2  ;;  %3206 = vtanh.f32 %v3719_v28  ;;  %v1215_v25 = vmul.f32 0.5, %v1121_v29 }
 0x2d7   : > { %v1333_v36 = vpack.c.bf16 %v1303_v27, %v1302_v32  ;;  %3208 = vtanh.f32 %v3722_v33  ;;  %v1213_v38 = vmul.f32 0.5, %v1113_v34 }
 0x2d8   : > { %v3199_v39 = vpop.eup %3198  ;;  %3210 = vtanh.f32 %v1215_v25  ;;  %v1332_v40 = vpack.c.bf16 %v1301_v30, %v1300_v37 }
 0x2d9   : > { %v3201_v35 = vpop.eup %3200  ;;  %v1274_v43 = vadd.f32 1.0, %v3199_v39  ;;  %3212 = vtanh.f32 %v1213_v38  ;;  %v2835_v42 = vpop.f32.mrb[44].mxu0 }
 0x2da   : > { %v3203_v44 = vpop.eup %3202  ;;  %v1272_v45 = vadd.f32 1.0, %v3201_v35  ;;  %v1134_v41 = vadd.f32 %v2835_v42, %v3707_v54  ;;  %v1125_v46 = vpop.f32.mrb[45].mxu0  ;;  %2869 = vmatprep.mubr.bf16.mxu1 %v1332_v40 }
 0x2db   : > { %v3205_v47 = vpop.eup %3204  ;;  %v1275_v48 = vadd.f32 1.0, %v3203_v44  ;;  %v1126_v49 = vadd.f32 %v3707_v54, %v1125_v46  ;;  %v2836_v50 = vpop.f32.mrb[46].mxu0  ;;  %2870 = vmatmul.mubr.bf16.vlgmr.msra.gmra.mrb[32].mxu1 %v1333_v36  ;;  %v1306_v59 = vmul.f32 %v1274_v43, %v1210_v8 }
 0x2dc   : > { %v1273_v52 = vadd.f32 1.0, %v3205_v47  ;;  %v3729_v55 = vmul.f32 0.5, %v1134_v41  ;;  %v1137_v57 = vadd.f32 %v2836_v50, %v3707_v54  ;;  %v1128_v58 = vpop.f32.mrb[47].mxu0  ;;  %v1304_v56 = vmul.f32 %v1272_v45, %v1208_v9 }
 0x2dd   : > { %v1307_v60 = vmul.f32 %v1275_v48, %v1211_v11  ;;  %v3732_v53 = vmul.f32 0.5, %v1126_v49  ;;  %v1129_v62 = vadd.f32 %v3707_v54, %v1128_v58 }
 0x2de   : > { %v1305_v1 = vmul.f32 %v1273_v52, %v1209_v12  ;;  %3214 = vtanh.f32 %v3729_v55  ;;  %v1219_v51 = vmul.f32 0.5, %v1137_v57 }
 0x2df   : > { %3216 = vtanh.f32 %v3732_v53  ;;  %v1217_v61 = vmul.f32 0.5, %v1129_v62  ;;  %v1335_v2 = vpack.c.bf16 %v1307_v60, %v1306_v59 }
 0x2e0   : > { %v3207_v3 = vpop.eup %3206  ;;  %3218 = vtanh.f32 %v1219_v51  ;;  %v1334_v63 = vpack.c.bf16 %v1305_v1, %v1304_v56 }
 0x2e1   : > { %v3209_v0 = vpop.eup %3208  ;;  %v1278_v6 = vadd.f32 1.0, %v3207_v3  ;;  %3220 = vtanh.f32 %v1217_v61  ;;  %v2839_v7 = vpop.f32.mrb[48].mxu0 }
 0x2e2   : > { %v3211_v8 = vpop.eup %3210  ;;  %v1276_v4 = vadd.f32 1.0, %v3209_v0  ;;  %v1150_v5 = vadd.f32 %v2839_v7, %v3707_v54  ;;  %v1141_v9 = vpop.f32.mrb[49].mxu0  ;;  %2873 = vmatprep.mubr.bf16.mxu1 %v1334_v63 }
 0x2e3   : > { %v3213_v10 = vpop.eup %3212  ;;  %v1279_v11 = vadd.f32 1.0, %v3211_v8  ;;  %v1142_v12 = vadd.f32 %v3707_v54, %v1141_v9  ;;  %v2840_v13 = vpop.f32.mrb[50].mxu0  ;;  %2874 = vmatmul.mubr.bf16.gmra.mrb[36].mxu1 %v1335_v2  ;;  %v1310_v20 = vmul.f32 %v1278_v6, %v3719_v28 }
 0x2e4   : > { %v1277_v14 = vadd.f32 1.0, %v3213_v10  ;;  %v3739_v16 = vmul.f32 0.5, %v1150_v5  ;;  %v1153_v17 = vadd.f32 %v2840_v13, %v3707_v54  ;;  %v1144_v18 = vpop.f32.mrb[51].mxu0  ;;  %v1308_v23 = vmul.f32 %v1276_v4, %v3722_v33 }
 0x2e5   : > { %v1311_v21 = vmul.f32 %v1279_v11, %v1215_v25  ;;  %v3743_v15 = vmul.f32 0.5, %v1142_v12  ;;  %v1145_v22 = vadd.f32 %v3707_v54, %v1144_v18 }
 0x2e6   : > { %v1309_v26 = vmul.f32 %v1277_v14, %v1213_v38  ;;  %3222 = vtanh.f32 %v3739_v16  ;;  %v1223_v19 = vmul.f32 0.5, %v1153_v17 }
 0x2e7   : > { %3224 = vtanh.f32 %v3743_v15  ;;  %v1221_v24 = vmul.f32 0.5, %v1145_v22  ;;  %v1337_v29 = vpack.c.bf16 %v1311_v21, %v1310_v20 }
 0x2e8   : > { %v3215_v31 = vpop.eup %3214  ;;  %3226 = vtanh.f32 %v1223_v19  ;;  %v1336_v32 = vpack.c.bf16 %v1309_v26, %v1308_v23 }
 0x2e9   : > { %v3217_v27 = vpop.eup %3216  ;;  %v1282_v28 = vadd.f32 1.0, %v3215_v31  ;;  %3228 = vtanh.f32 %v1221_v24  ;;  %v2843_v34 = vpop.f32.mrb[52].mxu0 }
 0x2ea   : > { %v3219_v37 = vpop.eup %3218  ;;  %v1280_v30 = vadd.f32 1.0, %v3217_v27  ;;  %v1166_v25 = vadd.f32 %v2843_v34, %v3707_v54  ;;  %v1157_v33 = vpop.f32.mrb[53].mxu0  ;;  %2877 = vmatprep.mubr.bf16.mxu1 %v1336_v32 }
 0x2eb   : > { %v3221_v36 = vpop.eup %3220  ;;  %v1283_v38 = vadd.f32 1.0, %v3219_v37  ;;  %v1158_v39 = vadd.f32 %v3707_v54, %v1157_v33  ;;  %v2844_v40 = vpop.f32.mrb[54].mxu0  ;;  %2878 = vmatmul.mubr.bf16.gmra.mrb[40].mxu1 %v1337_v29  ;;  %v1314_v45 = vmul.f32 %v1282_v28, %v3729_v55 }
 0x2ec   : > { %v1281_v35 = vadd.f32 1.0, %v3221_v36  ;;  %v3751_v43 = vmul.f32 0.5, %v1166_v25  ;;  %v1169_v42 = vadd.f32 %v2844_v40, %v3707_v54  ;;  %v1160_v44 = vpop.f32.mrb[55].mxu0  ;;  %v1312_v48 = vmul.f32 %v1280_v30, %v3732_v53 }
 0x2ed   : > { %v1315_v41 = vmul.f32 %v1283_v38, %v1219_v51  ;;  %v3755_v46 = vmul.f32 0.5, %v1158_v39  ;;  %v1161_v47 = vadd.f32 %v3707_v54, %v1160_v44 }
 0x2ee   : > { %v1313_v49 = vmul.f32 %v1281_v35, %v1217_v61  ;;  %3230 = vtanh.f32 %v3751_v43  ;;  %v1227_v50 = vmul.f32 0.5, %v1169_v42 }
 0x2ef   : > { %3232 = vtanh.f32 %v3755_v46  ;;  %v1225_v52 = vmul.f32 0.5, %v1161_v47  ;;  %v1339_v57 = vpack.c.bf16 %v1315_v41, %v1314_v45 }
 0x2f0   : > { %v3223_v58 = vpop.eup %3222  ;;  %3234 = vtanh.f32 %v1227_v50  ;;  %v1338_v59 = vpack.c.bf16 %v1313_v49, %v1312_v48 }
 0x2f1   : > { %v3225_v60 = vpop.eup %3224  ;;  %v1286_v55 = vadd.f32 1.0, %v3223_v58  ;;  %3236 = vtanh.f32 %v1225_v52  ;;  %v2847_v62 = vpop.f32.mrb[56].mxu0 }
 0x2f2   : > { %v3227_v56 = vpop.eup %3226  ;;  %v1284_v1 = vadd.f32 1.0, %v3225_v60  ;;  %v1182_v51 = vadd.f32 %v2847_v62, %v3707_v54  ;;  %v1173_v53 = vpop.f32.mrb[57].mxu0  ;;  %2881 = vmatprep.mubr.bf16.mxu1 %v1338_v59 }
 0x2f3   : > { %v3229_v61 = vpop.eup %3228  ;;  %v1287_v2 = vadd.f32 1.0, %v3227_v56  ;;  %v1174_v3 = vadd.f32 %v3707_v54, %v1173_v53  ;;  %v2848_v63 = vpop.f32.mrb[58].mxu0  ;;  %2882 = vmatmul.mubr.bf16.gmra.mrb[44].mxu1 %v1339_v57  ;;  %v1318_v4 = vmul.f32 %v1286_v55, %v3739_v16 }
 0x2f4   : > { %v1285_v0 = vadd.f32 1.0, %v3229_v61  ;;  %v1230_v6 = vmul.f32 0.5, %v1182_v51  ;;  %v1185_v7 = vadd.f32 %v2848_v63, %v3707_v54  ;;  %v1176_v8 = vpop.f32.mrb[59].mxu0  ;;  %v1316_v11 = vmul.f32 %v1284_v1, %v3743_v15 }
 0x2f5   : > { %v1319_v5 = vmul.f32 %v1287_v2, %v1223_v19  ;;  %v1228_v9 = vmul.f32 0.5, %v1174_v3  ;;  %v1177_v10 = vadd.f32 %v3707_v54, %v1176_v8 }
 0x2f6   : > { %v1317_v12 = vmul.f32 %v1285_v0, %v1221_v24  ;;  %3238 = vtanh.f32 %v1230_v6  ;;  %v1231_v13 = vmul.f32 0.5, %v1185_v7 }
 0x2f7   : > { %3240 = vtanh.f32 %v1228_v9  ;;  %v1229_v14 = vmul.f32 0.5, %v1177_v10  ;;  %v1341_v17 = vpack.c.bf16 %v1319_v5, %v1318_v4  ;;  %v3051_v4 = vld [vmem:[%s4096_s1 + $0x128] sm:$0xff]   ;;  %v3052_v5 = vld [vmem:[%s4096_s1 + $0x130] sm:$0xff]   ;;  %v3785_v10 = vld [vmem:[%s4096_s1 + $0x140] sm:$0xff]  }
 0x2f8   : > { %v3231_v18 = vpop.eup %3230  ;;  %3242 = vtanh.f32 %v1231_v13  ;;  %v1340_v20 = vpack.c.bf16 %v1317_v12, %v1316_v11  ;;  %2911 = vmatprep.subr.bf16.mxu0 %v3051_v4  ;;  %2997 = vmatprep.subr.bf16.mxu1 %v3785_v10  ;;  %v3791_v11 = vld [vmem:[%s4096_s1 + $0x148] sm:$0xff]   ;;  %v3799_v12 = vld [vmem:[%s4096_s1 + $0x150] sm:$0xff]  }
 0x2f9   : > { %v3233_v21 = vpop.eup %3232  ;;  %v1290_v22 = vadd.f32 1.0, %v3231_v18  ;;  %3244 = vtanh.f32 %v1229_v14  ;;  %v2851_v23 = vpop.f32.mrb[60].mxu0  ;;  %2912 = vmatpush3.bf16.msra.mxu0 %v3051_v4  ;;  %3005 = vmatpush3.bf16.msra.mxu1 %v3785_v10 }
 0x2fa   : > { %v3235_v16 = vpop.eup %3234  ;;  %v1288_v26 = vadd.f32 1.0, %v3233_v21  ;;  %v1198_v19 = vadd.f32 %v2851_v23, %v3707_v54  ;;  %v1189_v29 = vpop.f32.mrb[61].mxu0  ;;  %2885 = vmatprep.mubr.bf16.mxu1 %v1340_v20  ;;  %2913 = vmatprep.subr.bf16.mxu0 %v3052_v5 }
 0x2fb   : > { %v3237_v15 = vpop.eup %3236  ;;  %v1291_v24 = vadd.f32 1.0, %v3235_v16  ;;  %v1190_v31 = vadd.f32 %v3707_v54, %v1189_v29  ;;  %v2852_v32 = vpop.f32.mrb[62].mxu0  ;;  %2886 = vmatmul.mubr.bf16.gmra.mrb[48].mxu1 %v1341_v17  ;;  %v1322_v30 = vmul.f32 %v1290_v22, %v3751_v43  ;;  %2998 = vmatprep.subr.bf16.mxu1 %v3791_v11 }
 0x2fc   : > { %v1289_v27 = vadd.f32 1.0, %v3237_v15  ;;  %v1234_v28 = vmul.f32 0.5, %v1198_v19  ;;  %v1201_v34 = vadd.f32 %v2852_v32, %v3707_v54  ;;  %v1192_v37 = vpop.f32.mrb[63].mxu0  ;;  %v1320_v38 = vmul.f32 %v1288_v26, %v3755_v46 }
 0x2fd   : > { %v1323_v25 = vmul.f32 %v1291_v24, %v1227_v50  ;;  %v1232_v33 = vmul.f32 0.5, %v1190_v31  ;;  %v1193_v36 = vadd.f32 %v3707_v54, %v1192_v37  ;;  %2914 = vmatpush3.bf16.msra.mxu0 %v3052_v5  ;;  %3006 = vmatpush3.bf16.msra.mxu1 %v3791_v11 }
 0x2fe   : > { %v1321_v39 = vmul.f32 %v1289_v27, %v1225_v52  ;;  %3246 = vtanh.f32 %v1234_v28  ;;  %v1235_v40 = vmul.f32 0.5, %v1201_v34  ;;  %2999 = vmatprep.subr.bf16.mxu1 %v3799_v12 }
 0x2ff   : > { %3248 = vtanh.f32 %v1232_v33  ;;  %v1233_v35 = vmul.f32 0.5, %v1193_v36  ;;  %v1343_v42 = vpack.c.bf16 %v1323_v25, %v1322_v30 }
 0x300   : > { %v3239_v44 = vpop.eup %3238  ;;  %3250 = vtanh.f32 %v1235_v40  ;;  %v1342_v45 = vpack.c.bf16 %v1321_v39, %v1320_v38 }
 0x301   : > { %v3241_v41 = vpop.eup %3240  ;;  %v1294_v47 = vadd.f32 1.0, %v3239_v44  ;;  %3252 = vtanh.f32 %v1233_v35  ;;  %3007 = vmatpush3.bf16.msra.mxu1 %v3799_v12 }
 0x302   : > { %v3243_v48 = vpop.eup %3242  ;;  %v1292_v43 = vadd.f32 1.0, %v3241_v41  ;;  %2889 = vmatprep.mubr.bf16.mxu1 %v1342_v45 }
 0x303   : > { %v3245_v49 = vpop.eup %3244  ;;  %v1295_v50 = vadd.f32 1.0, %v3243_v48  ;;  %2890 = vmatmul.mubr.bf16.gmra.mrb[52].mxu1 %v1343_v42  ;;  %v1326_v46 = vmul.f32 %v1294_v47, %v1230_v6 }
 0x304   : > { %v1293_v54 = vadd.f32 1.0, %v3245_v49  ;;  %v1324_v57 = vmul.f32 %v1292_v43, %v1228_v9  ;;  %v3053_v9 = vld [vmem:[%s4096_s1 + $0x138] sm:$0xff]  }
 0x305   : > { %v1327_v52 = vmul.f32 %v1295_v50, %v1231_v13  ;;  %2915 = vmatprep.subr.bf16.mxu0 %v3053_v9  ;;  %v3806_v13 = vld [vmem:[%s4096_s1 + $0x158] sm:$0xff]  }
 0x306   : > { %v1325_v58 = vmul.f32 %v1293_v54, %v1229_v14  ;;  %2916 = vmatpush3.bf16.msra.mxu0 %v3053_v9  ;;  %3000 = vmatprep.subr.bf16.mxu1 %v3806_v13  ;;  %v3814_v14 = vld [vmem:[%s4097_s2 + $0x3] ss:$0 sm:$0xff] }
 0x307   : > { %v1345_v59 = vpack.c.bf16 %v1327_v52, %v1326_v46  ;;  %2949 = vmatprep.subr.bf16.mxu0 %v3785_v10  ;;  %3008 = vmatpush3.bf16.msra.mxu1 %v3806_v13 }
 0x308   : > { %v3247_v60 = vpop.eup %3246  ;;  %v1344_v55 = vpack.c.bf16 %v1325_v58, %v1324_v57 }
 0x309   : > { %v3249_v62 = vpop.eup %3248  ;;  %v1298_v56 = vadd.f32 1.0, %v3247_v60 }
 0x30a   : > { %v3251_v1 = vpop.eup %3250  ;;  %v1296_v51 = vadd.f32 1.0, %v3249_v62  ;;  %2893 = vmatprep.mubr.bf16.mxu1 %v1344_v55 }
 0x30b   : > { %v3253_v53 = vpop.eup %3252  ;;  %v1299_v61 = vadd.f32 1.0, %v3251_v1  ;;  %2894 = vmatmul.mubr.bf16.gmra.mrb[56].mxu1 %v1345_v59  ;;  %v1330_v3 = vmul.f32 %v1298_v56, %v1234_v28 }
 0x30c   : > { %v1297_v2 = vadd.f32 1.0, %v3253_v53  ;;  %v1328_v0 = vmul.f32 %v1296_v51, %v1232_v33 }
 0x30d   : > { %v1331_v63 = vmul.f32 %v1299_v61, %v1235_v40 }
 0x30e   : > { %v1329_v7 = vmul.f32 %v1297_v2, %v1233_v35 }
 0x30f   : > { %v1347_v6 = vpack.c.bf16 %v1331_v63, %v1330_v3 }
 0x310   : > { %v1346_v8 = vpack.c.bf16 %v1329_v7, %v1328_v0 }
 0x312   : > { %2897 = vmatprep.mubr.bf16.mxu1 %v1346_v8 }
 0x313   : > { %2898 = vmatmul.mubr.bf16.gmra.mrb[60].mxu1 %v1347_v6 }
 0x3ae   : > { %v2871_v17 = vpop.f32.mrb[32].mxu1 }
 0x3af   : > { %v1464_v18 = vadd.f32 %v2871_v17, %v3814_v14  ;;  %v1455_v20 = vpop.f32.mrb[33].mxu1 }
 0x3b0   : > { %v1456_v21 = vadd.f32 %v3814_v14, %v1455_v20  ;;  %v2872_v22 = vpop.f32.mrb[34].mxu1 }
 0x3b1   : > { %v1584_v23 = vmul.f32 0.5, %v1464_v18  ;;  %v1467_v16 = vadd.f32 %v2872_v22, %v3814_v14  ;;  %v1458_v26 = vpop.f32.mrb[35].mxu1 }
 0x3b2   : > { %v1582_v19 = vmul.f32 0.5, %v1456_v21  ;;  %v1459_v29 = vadd.f32 %v3814_v14, %v1458_v26 }
 0x3b3   : > { %3254 = vtanh.f32 %v1584_v23  ;;  %v1585_v15 = vmul.f32 0.5, %v1467_v16 }
 0x3b4   : > { %3256 = vtanh.f32 %v1582_v19  ;;  %v1583_v24 = vmul.f32 0.5, %v1459_v29 }
 0x3b5   : > { %3258 = vtanh.f32 %v1585_v15 }
 0x3b6   : > { %3260 = vtanh.f32 %v1583_v24  ;;  %v2875_v31 = vpop.f32.mrb[36].mxu1 }
 0x3b7   : > { %v1480_v32 = vadd.f32 %v2875_v31, %v3814_v14  ;;  %v1471_v27 = vpop.f32.mrb[37].mxu1 }
 0x3b8   : > { %v1472_v28 = vadd.f32 %v3814_v14, %v1471_v27  ;;  %v2876_v34 = vpop.f32.mrb[38].mxu1 }
 0x3b9   : > { %v1588_v37 = vmul.f32 0.5, %v1480_v32  ;;  %v1483_v30 = vadd.f32 %v2876_v34, %v3814_v14  ;;  %v1474_v25 = vpop.f32.mrb[39].mxu1 }
 0x3ba   : > { %v1586_v33 = vmul.f32 0.5, %v1472_v28  ;;  %v1475_v36 = vadd.f32 %v3814_v14, %v1474_v25 }
 0x3bb   : > { %3262 = vtanh.f32 %v1588_v37  ;;  %v1589_v38 = vmul.f32 0.5, %v1483_v30 }
 0x3bc   : > { %3264 = vtanh.f32 %v1586_v33  ;;  %v1587_v39 = vmul.f32 0.5, %v1475_v36 }
 0x3bd   : > { %v3255_v40 = vpop.eup %3254  ;;  %3266 = vtanh.f32 %v1589_v38 }
 0x3be   : > { %v3257_v35 = vpop.eup %3256  ;;  %v1648_v42 = vadd.f32 1.0, %v3255_v40  ;;  %3268 = vtanh.f32 %v1587_v39  ;;  %v2879_v44 = vpop.f32.mrb[40].mxu1 }
 0x3bf   : > { %v3259_v45 = vpop.eup %3258  ;;  %v1646_v41 = vadd.f32 1.0, %v3257_v35  ;;  %v1496_v47 = vadd.f32 %v2879_v44, %v3814_v14  ;;  %v1487_v48 = vpop.f32.mrb[41].mxu1 }
 0x3c0   : > { %v3261_v43 = vpop.eup %3260  ;;  %v1649_v49 = vadd.f32 1.0, %v3259_v45  ;;  %v1488_v50 = vadd.f32 %v3814_v14, %v1487_v48  ;;  %v2880_v54 = vpop.f32.mrb[42].mxu1  ;;  %v1680_v59 = vmul.f32 %v1648_v42, %v1584_v23 }
 0x3c1   : > { %v1647_v46 = vadd.f32 1.0, %v3261_v43  ;;  %v3826_v52 = vmul.f32 0.5, %v1496_v47  ;;  %v1499_v57 = vadd.f32 %v2880_v54, %v3814_v14  ;;  %v1490_v58 = vpop.f32.mrb[43].mxu1  ;;  %v1678_v56 = vmul.f32 %v1646_v41, %v1582_v19 }
 0x3c2   : > { %v1681_v60 = vmul.f32 %v1649_v49, %v1585_v15  ;;  %v3829_v55 = vmul.f32 0.5, %v1488_v50  ;;  %v1491_v62 = vadd.f32 %v3814_v14, %v1490_v58 }
 0x3c3   : > { %v1679_v1 = vmul.f32 %v1647_v46, %v1583_v24  ;;  %3270 = vtanh.f32 %v3826_v52  ;;  %v3833_v51 = vmul.f32 0.5, %v1499_v57 }
 0x3c4   : > { %v1711_v53 = vpack.c.bf16 %v1681_v60, %v1680_v59  ;;  %3272 = vtanh.f32 %v3829_v55  ;;  %v3836_v61 = vmul.f32 0.5, %v1491_v62 }
 0x3c5   : > { %v3263_v2 = vpop.eup %3262  ;;  %3274 = vtanh.f32 %v3833_v51  ;;  %v1710_v3 = vpack.c.bf16 %v1679_v1, %v1678_v56 }
 0x3c6   : > { %v3265_v63 = vpop.eup %3264  ;;  %v1652_v0 = vadd.f32 1.0, %v3263_v2  ;;  %3276 = vtanh.f32 %v3836_v61  ;;  %v2883_v7 = vpop.f32.mrb[44].mxu1 }
 0x3c7   : > { %v3267_v6 = vpop.eup %3266  ;;  %v1650_v8 = vadd.f32 1.0, %v3265_v63  ;;  %v1512_v4 = vadd.f32 %v2883_v7, %v3814_v14  ;;  %v1503_v5 = vpop.f32.mrb[45].mxu1  ;;  %2917 = vmatprep.mubr.bf16.mxu0 %v1710_v3 }
 0x3c8   : > { %v3269_v9 = vpop.eup %3268  ;;  %v1653_v17 = vadd.f32 1.0, %v3267_v6  ;;  %v1504_v18 = vadd.f32 %v3814_v14, %v1503_v5  ;;  %v2884_v20 = vpop.f32.mrb[46].mxu1  ;;  %2918 = vmatmul.mubr.bf16.vlgmr.msra.gmra.mrb[64].mxu0 %v1711_v53  ;;  %v1684_v26 = vmul.f32 %v1652_v0, %v1588_v37 }
 0x3c9   : > { %v1651_v21 = vadd.f32 1.0, %v3269_v9  ;;  %v3842_v22 = vmul.f32 0.5, %v1512_v4  ;;  %v1515_v23 = vadd.f32 %v2884_v20, %v3814_v14  ;;  %v1506_v16 = vpop.f32.mrb[47].mxu1  ;;  %2950 = vmatpush3.bf16.msra.mxu0 %v3785_v10  ;;  %v1682_v24 = vmul.f32 %v1650_v8, %v1586_v33 }
 0x3ca   : > { %v1685_v19 = vmul.f32 %v1653_v17, %v1589_v38  ;;  %v3846_v29 = vmul.f32 0.5, %v1504_v18  ;;  %v1507_v15 = vadd.f32 %v3814_v14, %v1506_v16  ;;  %2951 = vmatprep.subr.bf16.mxu0 %v3791_v11 }
 0x3cb   : > { %v1683_v31 = vmul.f32 %v1651_v21, %v1587_v39  ;;  %3278 = vtanh.f32 %v3842_v22  ;;  %v3851_v32 = vmul.f32 0.5, %v1515_v23 }
 0x3cc   : > { %3280 = vtanh.f32 %v3846_v29  ;;  %v3854_v27 = vmul.f32 0.5, %v1507_v15  ;;  %v1713_v28 = vpack.c.bf16 %v1685_v19, %v1684_v26 }
 0x3cd   : > { %v3271_v10 = vpop.eup %3270  ;;  %3282 = vtanh.f32 %v3851_v32  ;;  %v1712_v34 = vpack.c.bf16 %v1683_v31, %v1682_v24  ;;  %2952 = vmatpush3.bf16.msra.mxu0 %v3791_v11 }
 0x3ce   : > { %v3273_v37 = vpop.eup %3272  ;;  %v1656_v30 = vadd.f32 1.0, %v3271_v10  ;;  %3284 = vtanh.f32 %v3854_v27  ;;  %v2887_v25 = vpop.f32.mrb[48].mxu1  ;;  %2953 = vmatprep.subr.bf16.mxu0 %v3799_v12 }
 0x3cf   : > { %v3275_v33 = vpop.eup %3274  ;;  %v1654_v36 = vadd.f32 1.0, %v3273_v37  ;;  %v1528_v38 = vadd.f32 %v2887_v25, %v3814_v14  ;;  %v1519_v39 = vpop.f32.mrb[49].mxu1  ;;  %2921 = vmatprep.mubr.bf16.mxu0 %v1712_v34 }
 0x3d0   : > { %v3277_v40 = vpop.eup %3276  ;;  %v1657_v35 = vadd.f32 1.0, %v3275_v33  ;;  %v1520_v42 = vadd.f32 %v3814_v14, %v1519_v39  ;;  %v2888_v44 = vpop.f32.mrb[50].mxu1  ;;  %2922 = vmatmul.mubr.bf16.gmra.mrb[68].mxu0 %v1713_v28  ;;  %v1688_v48 = vmul.f32 %v1656_v30, %v3826_v52 }
 0x3d1   : > { %v1655_v11 = vadd.f32 1.0, %v3277_v40  ;;  %v3862_v45 = vmul.f32 0.5, %v1528_v38  ;;  %v1531_v41 = vadd.f32 %v2888_v44, %v3814_v14  ;;  %v1522_v47 = vpop.f32.mrb[51].mxu1  ;;  %2954 = vmatpush3.bf16.msra.mxu0 %v3799_v12  ;;  %v1686_v54 = vmul.f32 %v1654_v36, %v3829_v55 }
 0x3d2   : > { %v1689_v43 = vmul.f32 %v1657_v35, %v3833_v51  ;;  %v3868_v49 = vmul.f32 0.5, %v1520_v42  ;;  %v1523_v50 = vadd.f32 %v3814_v14, %v1522_v47  ;;  %2955 = vmatprep.subr.bf16.mxu0 %v3806_v13 }
 0x3d3   : > { %v1687_v46 = vmul.f32 %v1655_v11, %v3836_v61  ;;  %3286 = vtanh.f32 %v3862_v45  ;;  %v1601_v57 = vmul.f32 0.5, %v1531_v41 }
 0x3d4   : > { %3288 = vtanh.f32 %v3868_v49  ;;  %v1599_v12 = vmul.f32 0.5, %v1523_v50  ;;  %v1715_v58 = vpack.c.bf16 %v1689_v43, %v1688_v48 }
 0x3d5   : > { %v3279_v52 = vpop.eup %3278  ;;  %3290 = vtanh.f32 %v1601_v57  ;;  %v1714_v59 = vpack.c.bf16 %v1687_v46, %v1686_v54  ;;  %2956 = vmatpush3.bf16.msra.mxu0 %v3806_v13 }
 0x3d6   : > { %v3281_v60 = vpop.eup %3280  ;;  %v1660_v62 = vadd.f32 1.0, %v3279_v52  ;;  %3292 = vtanh.f32 %v1599_v12  ;;  %v2891_v56 = vpop.f32.mrb[52].mxu1 }
 0x3d7   : > { %v3283_v1 = vpop.eup %3282  ;;  %v1658_v55 = vadd.f32 1.0, %v3281_v60  ;;  %v1544_v51 = vadd.f32 %v2891_v56, %v3814_v14  ;;  %v1535_v53 = vpop.f32.mrb[53].mxu1  ;;  %2925 = vmatprep.mubr.bf16.mxu0 %v1714_v59 }
 0x3d8   : > { %v3285_v61 = vpop.eup %3284  ;;  %v1661_v2 = vadd.f32 1.0, %v3283_v1  ;;  %v1536_v3 = vadd.f32 %v3814_v14, %v1535_v53  ;;  %v2892_v63 = vpop.f32.mrb[54].mxu1  ;;  %2926 = vmatmul.mubr.bf16.gmra.mrb[72].mxu0 %v1715_v58  ;;  %v1692_v8 = vmul.f32 %v1660_v62, %v3842_v22 }
 0x3d9   : > { %v1659_v0 = vadd.f32 1.0, %v3285_v61  ;;  %v3879_v7 = vmul.f32 0.5, %v1544_v51  ;;  %v1547_v13 = vadd.f32 %v2892_v63, %v3814_v14  ;;  %v1538_v6 = vpop.f32.mrb[55].mxu1  ;;  %v1690_v17 = vmul.f32 %v1658_v55, %v3846_v29 }
 0x3da   : > { %v1693_v4 = vmul.f32 %v1661_v2, %v3851_v32  ;;  %v3884_v5 = vmul.f32 0.5, %v1536_v3  ;;  %v1539_v9 = vadd.f32 %v3814_v14, %v1538_v6 }
 0x3db   : > { %v1691_v18 = vmul.f32 %v1659_v0, %v3854_v27  ;;  %3294 = vtanh.f32 %v3879_v7  ;;  %v1605_v20 = vmul.f32 0.5, %v1547_v13 }
 0x3dc   : > { %3296 = vtanh.f32 %v3884_v5  ;;  %v1603_v21 = vmul.f32 0.5, %v1539_v9  ;;  %v1717_v23 = vpack.c.bf16 %v1693_v4, %v1692_v8 }
 0x3dd   : > { %v3287_v16 = vpop.eup %3286  ;;  %3298 = vtanh.f32 %v1605_v20  ;;  %v1716_v22 = vpack.c.bf16 %v1691_v18, %v1690_v17 }
 0x3de   : > { %v3289_v26 = vpop.eup %3288  ;;  %v1664_v19 = vadd.f32 1.0, %v3287_v16  ;;  %3300 = vtanh.f32 %v1603_v21  ;;  %v2895_v15 = vpop.f32.mrb[56].mxu1 }
 0x3df   : > { %v3291_v24 = vpop.eup %3290  ;;  %v1662_v31 = vadd.f32 1.0, %v3289_v26  ;;  %v1560_v29 = vadd.f32 %v2895_v15, %v3814_v14  ;;  %v1551_v32 = vpop.f32.mrb[57].mxu1  ;;  %2929 = vmatprep.mubr.bf16.mxu0 %v1716_v22 }
 0x3e0   : > { %v3293_v27 = vpop.eup %3292  ;;  %v1665_v28 = vadd.f32 1.0, %v3291_v24  ;;  %v1552_v10 = vadd.f32 %v3814_v14, %v1551_v32  ;;  %v2896_v34 = vpop.f32.mrb[58].mxu1  ;;  %2930 = vmatmul.mubr.bf16.gmra.mrb[76].mxu0 %v1717_v23  ;;  %v1696_v36 = vmul.f32 %v1664_v19, %v3862_v45 }
 0x3e1   : > { %v1663_v37 = vadd.f32 1.0, %v3293_v27  ;;  %v1608_v30 = vmul.f32 0.5, %v1560_v29  ;;  %v1563_v25 = vadd.f32 %v2896_v34, %v3814_v14  ;;  %v1554_v33 = vpop.f32.mrb[59].mxu1  ;;  %v1694_v35 = vmul.f32 %v1662_v31, %v3868_v49 }
 0x3e2   : > { %v1697_v38 = vmul.f32 %v1665_v28, %v1601_v57  ;;  %v1606_v39 = vmul.f32 0.5, %v1552_v10  ;;  %v1555_v40 = vadd.f32 %v3814_v14, %v1554_v33 }
 0x3e3   : > { %v1695_v42 = vmul.f32 %v1663_v37, %v1599_v12  ;;  %3302 = vtanh.f32 %v1608_v30  ;;  %v1609_v44 = vmul.f32 0.5, %v1563_v25 }
 0x3e4   : > { %3304 = vtanh.f32 %v1606_v39  ;;  %v1607_v11 = vmul.f32 0.5, %v1555_v40  ;;  %v1719_v41 = vpack.c.bf16 %v1697_v38, %v1696_v36  ;;  %v3058_v36 = vld [vmem:[%s4096_s1 + $0x160] sm:$0xff]   ;;  %v3059_v38 = vld [vmem:[%s4096_s1 + $0x168] sm:$0xff]   ;;  %v3061_v40 = vld [vmem:[%s4096_s1 + $0x178] sm:$0xff]  }
 0x3e5   : > { %v3295_v47 = vpop.eup %3294  ;;  %3306 = vtanh.f32 %v1609_v44  ;;  %v1718_v48 = vpack.c.bf16 %v1695_v42, %v1694_v35  ;;  %3001 = vmatprep.subr.bf16.mxu1 %v3058_v36  ;;  %2957 = vmatprep.subr.bf16.mxu0 %v3058_v36  ;;  %v3918_v35 = vld [vmem:[%s4097_s2 + $0x4] ss:$0 sm:$0xff] }
 0x3e6   : > { %v3297_v43 = vpop.eup %3296  ;;  %v1668_v50 = vadd.f32 1.0, %v3295_v47  ;;  %3308 = vtanh.f32 %v1607_v11  ;;  %v2899_v54 = vpop.f32.mrb[60].mxu1  ;;  %3009 = vmatpush3.bf16.msra.mxu1 %v3058_v36  ;;  %2958 = vmatpush3.bf16.msra.mxu0 %v3058_v36 }
 0x3e7   : > { %v3299_v45 = vpop.eup %3298  ;;  %v1666_v46 = vadd.f32 1.0, %v3297_v43  ;;  %v1576_v57 = vadd.f32 %v2899_v54, %v3814_v14  ;;  %v1567_v58 = vpop.f32.mrb[61].mxu1  ;;  %2933 = vmatprep.mubr.bf16.mxu0 %v1718_v48  ;;  %3002 = vmatprep.subr.bf16.mxu1 %v3059_v38 }
 0x3e8   : > { %v3301_v49 = vpop.eup %3300  ;;  %v1669_v12 = vadd.f32 1.0, %v3299_v45  ;;  %v1568_v52 = vadd.f32 %v3814_v14, %v1567_v58  ;;  %v2900_v59 = vpop.f32.mrb[62].mxu1  ;;  %2934 = vmatmul.mubr.bf16.gmra.mrb[80].mxu0 %v1719_v41  ;;  %v1700_v55 = vmul.f32 %v1668_v50, %v3879_v7  ;;  %2959 = vmatprep.subr.bf16.mxu0 %v3059_v38 }
 0x3e9   : > { %v1667_v60 = vadd.f32 1.0, %v3301_v49  ;;  %v1612_v62 = vmul.f32 0.5, %v1576_v57  ;;  %v1579_v56 = vadd.f32 %v2900_v59, %v3814_v14  ;;  %v1570_v1 = vpop.f32.mrb[63].mxu1  ;;  %v1698_v2 = vmul.f32 %v1666_v46, %v3884_v5 }
 0x3ea   : > { %v1701_v51 = vmul.f32 %v1669_v12, %v1605_v20  ;;  %v1610_v53 = vmul.f32 0.5, %v1568_v52  ;;  %v1571_v61 = vadd.f32 %v3814_v14, %v1570_v1  ;;  %3010 = vmatpush3.bf16.msra.mxu1 %v3059_v38  ;;  %2960 = vmatpush3.bf16.msra.mxu0 %v3059_v38 }
 0x3eb   : > { %v1699_v3 = vmul.f32 %v1667_v60, %v1603_v21  ;;  %3310 = vtanh.f32 %v1612_v62  ;;  %v1613_v63 = vmul.f32 0.5, %v1579_v56 }
 0x3ec   : > { %3312 = vtanh.f32 %v1610_v53  ;;  %v1611_v0 = vmul.f32 0.5, %v1571_v61  ;;  %v1721_v13 = vpack.c.bf16 %v1701_v51, %v1700_v55 }
 0x3ed   : > { %v3303_v6 = vpop.eup %3302  ;;  %3314 = vtanh.f32 %v1613_v63  ;;  %v1720_v8 = vpack.c.bf16 %v1699_v3, %v1698_v2 }
 0x3ee   : > { %v3305_v4 = vpop.eup %3304  ;;  %v1672_v9 = vadd.f32 1.0, %v3303_v6  ;;  %3316 = vtanh.f32 %v1611_v0 }
 0x3ef   : > { %v3307_v17 = vpop.eup %3306  ;;  %v1670_v7 = vadd.f32 1.0, %v3305_v4  ;;  %2937 = vmatprep.mubr.bf16.mxu0 %v1720_v8 }
 0x3f0   : > { %v3309_v18 = vpop.eup %3308  ;;  %v1673_v20 = vadd.f32 1.0, %v3307_v17  ;;  %2938 = vmatmul.mubr.bf16.gmra.mrb[84].mxu0 %v1721_v13  ;;  %v1704_v5 = vmul.f32 %v1672_v9, %v1608_v30 }
 0x3f1   : > { %v1671_v14 = vadd.f32 1.0, %v3309_v18  ;;  %v1702_v23 = vmul.f32 %v1670_v7, %v1606_v39  ;;  %v3060_v39 = vld [vmem:[%s4096_s1 + $0x170] sm:$0xff]  }
 0x3f2   : > { %v1705_v21 = vmul.f32 %v1673_v20, %v1609_v44  ;;  %3003 = vmatprep.subr.bf16.mxu1 %v3060_v39  ;;  %2961 = vmatprep.subr.bf16.mxu0 %v3060_v39 }
 0x3f3   : > { %v1703_v16 = vmul.f32 %v1671_v14, %v1607_v11  ;;  %3011 = vmatpush3.bf16.msra.mxu1 %v3060_v39  ;;  %2962 = vmatpush3.bf16.msra.mxu0 %v3060_v39 }
 0x3f4   : > { %v1723_v22 = vpack.c.bf16 %v1705_v21, %v1704_v5  ;;  %2963 = vmatprep.subr.bf16.mxu0 %v3061_v40  ;;  %3004 = vmatprep.subr.bf16.mxu1 %v3061_v40 }
 0x3f5   : > { %v3311_v26 = vpop.eup %3310  ;;  %v1722_v19 = vpack.c.bf16 %v1703_v16, %v1702_v23 }
 0x3f6   : > { %v3313_v15 = vpop.eup %3312  ;;  %v1676_v24 = vadd.f32 1.0, %v3311_v26 }
 0x3f7   : > { %v3315_v31 = vpop.eup %3314  ;;  %v1674_v29 = vadd.f32 1.0, %v3313_v15  ;;  %2941 = vmatprep.mubr.bf16.mxu0 %v1722_v19  ;;  %2964 = vmatpush3.bf16.msra.mxu0 %v3061_v40 }
 0x3f8   : > { %v3317_v32 = vpop.eup %3316  ;;  %v1677_v27 = vadd.f32 1.0, %v3315_v31  ;;  %2942 = vmatmul.mubr.bf16.gmra.mrb[88].mxu0 %v1723_v22  ;;  %v1708_v10 = vmul.f32 %v1676_v24, %v1612_v62  ;;  %3012 = vmatpush3.bf16.msra.mxu1 %v3061_v40 }
 0x3f9   : > { %v1675_v28 = vadd.f32 1.0, %v3317_v32  ;;  %v1706_v37 = vmul.f32 %v1674_v29, %v1610_v53 }
 0x3fa   : > { %v1709_v34 = vmul.f32 %v1677_v27, %v1613_v63 }
 0x3fb   : > { %v1707_v25 = vmul.f32 %v1675_v28, %v1611_v0 }
 0x3fc   : > { %v1725_v30 = vpack.c.bf16 %v1709_v34, %v1708_v10 }
 0x3fd   : > { %v1724_v33 = vpack.c.bf16 %v1707_v25, %v1706_v37 }
 0x3ff   : > { %2945 = vmatprep.mubr.bf16.mxu0 %v1724_v33 }
 0x400   : > { %2946 = vmatmul.mubr.bf16.gmra.mrb[92].mxu0 %v1725_v30 }
 0x49b   : > { %v2919_v42 = vpop.f32.mrb[64].mxu0 }
 0x49c   : > { %v1842_v44 = vadd.f32 %v2919_v42, %v3918_v35  ;;  %v1833_v11 = vpop.f32.mrb[65].mxu0 }
 0x49d   : > { %v1834_v41 = vadd.f32 %v3918_v35, %v1833_v11  ;;  %v2920_v47 = vpop.f32.mrb[66].mxu0 }
 0x49e   : > { %v1962_v48 = vmul.f32 0.5, %v1842_v44  ;;  %v1845_v43 = vadd.f32 %v2920_v47, %v3918_v35  ;;  %v1836_v50 = vpop.f32.mrb[67].mxu0 }
 0x49f   : > { %v1960_v54 = vmul.f32 0.5, %v1834_v41  ;;  %v1837_v45 = vadd.f32 %v3918_v35, %v1836_v50 }
 0x4a0   : > { %3318 = vtanh.f32 %v1962_v48  ;;  %v1963_v46 = vmul.f32 0.5, %v1845_v43 }
 0x4a1   : > { %3320 = vtanh.f32 %v1960_v54  ;;  %v1961_v57 = vmul.f32 0.5, %v1837_v45 }
 0x4a2   : > { %3322 = vtanh.f32 %v1963_v46 }
 0x4a3   : > { %3324 = vtanh.f32 %v1961_v57  ;;  %v2923_v58 = vpop.f32.mrb[68].mxu0 }
 0x4a4   : > { %v1858_v49 = vadd.f32 %v2923_v58, %v3918_v35  ;;  %v1849_v12 = vpop.f32.mrb[69].mxu0 }
 0x4a5   : > { %v1850_v52 = vadd.f32 %v3918_v35, %v1849_v12  ;;  %v2924_v59 = vpop.f32.mrb[70].mxu0 }
 0x4a6   : > { %v1966_v60 = vmul.f32 0.5, %v1858_v49  ;;  %v1861_v62 = vadd.f32 %v2924_v59, %v3918_v35  ;;  %v1852_v56 = vpop.f32.mrb[71].mxu0 }
 0x4a7   : > { %v1964_v1 = vmul.f32 0.5, %v1850_v52  ;;  %v1853_v55 = vadd.f32 %v3918_v35, %v1852_v56 }
 0x4a8   : > { %3326 = vtanh.f32 %v1966_v60  ;;  %v1967_v51 = vmul.f32 0.5, %v1861_v62 }
 0x4a9   : > { %3328 = vtanh.f32 %v1964_v1  ;;  %v1965_v53 = vmul.f32 0.5, %v1853_v55 }
 0x4aa   : > { %v3319_v61 = vpop.eup %3318  ;;  %3330 = vtanh.f32 %v1967_v51 }
 0x4ab   : > { %v3321_v2 = vpop.eup %3320  ;;  %v2026_v3 = vadd.f32 1.0, %v3319_v61  ;;  %3332 = vtanh.f32 %v1965_v53  ;;  %v2927_v63 = vpop.f32.mrb[72].mxu0 }
 0x4ac   : > { %v3323_v0 = vpop.eup %3322  ;;  %v2024_v13 = vadd.f32 1.0, %v3321_v2  ;;  %v1874_v6 = vadd.f32 %v2927_v63, %v3918_v35  ;;  %v1865_v8 = vpop.f32.mrb[73].mxu0 }
 0x4ad   : > { %v3325_v4 = vpop.eup %3324  ;;  %v2027_v9 = vadd.f32 1.0, %v3323_v0  ;;  %v1866_v17 = vadd.f32 %v3918_v35, %v1865_v8  ;;  %v2928_v7 = vpop.f32.mrb[74].mxu0  ;;  %v2058_v21 = vmul.f32 %v2026_v3, %v1962_v48 }
 0x4ae   : > { %v2025_v18 = vadd.f32 1.0, %v3325_v4  ;;  %v3930_v20 = vmul.f32 0.5, %v1874_v6  ;;  %v1877_v14 = vadd.f32 %v2928_v7, %v3918_v35  ;;  %v1868_v5 = vpop.f32.mrb[75].mxu0  ;;  %v2056_v26 = vmul.f32 %v2024_v13, %v1960_v54 }
 0x4af   : > { %v2059_v23 = vmul.f32 %v2027_v9, %v1963_v46  ;;  %v3933_v16 = vmul.f32 0.5, %v1866_v17  ;;  %v1869_v22 = vadd.f32 %v3918_v35, %v1868_v5 }
 0x4b0   : > { %v2057_v19 = vmul.f32 %v2025_v18, %v1961_v57  ;;  %3334 = vtanh.f32 %v3930_v20  ;;  %v1971_v15 = vmul.f32 0.5, %v1877_v14 }
 0x4b1   : > { %v2089_v24 = vpack.c.bf16 %v2059_v23, %v2058_v21  ;;  %3336 = vtanh.f32 %v3933_v16  ;;  %v1969_v31 = vmul.f32 0.5, %v1869_v22 }
 0x4b2   : > { %v3327_v29 = vpop.eup %3326  ;;  %3338 = vtanh.f32 %v1971_v15  ;;  %v2088_v32 = vpack.c.bf16 %v2057_v19, %v2056_v26 }
 0x4b3   : > { %v3329_v27 = vpop.eup %3328  ;;  %v2030_v28 = vadd.f32 1.0, %v3327_v29  ;;  %3340 = vtanh.f32 %v1969_v31  ;;  %v2931_v10 = vpop.f32.mrb[76].mxu0 }
 0x4b4   : > { %v3331_v34 = vpop.eup %3330  ;;  %v2028_v37 = vadd.f32 1.0, %v3329_v27  ;;  %v1890_v25 = vadd.f32 %v2931_v10, %v3918_v35  ;;  %v1881_v30 = vpop.f32.mrb[77].mxu0  ;;  %2965 = vmatprep.mubr.bf16.mxu0 %v2088_v32 }
 0x4b5   : > { %v3333_v33 = vpop.eup %3332  ;;  %v2031_v36 = vadd.f32 1.0, %v3331_v34  ;;  %v1882_v38 = vadd.f32 %v3918_v35, %v1881_v30  ;;  %v2932_v39 = vpop.f32.mrb[78].mxu0  ;;  %2966 = vmatmul.mubr.bf16.vlgmr.msra.gmra.mrb[96].mxu0 %v2089_v24  ;;  %v2062_v41 = vmul.f32 %v2030_v28, %v1966_v60 }
 0x4b6   : > { %v2029_v40 = vadd.f32 1.0, %v3333_v33  ;;  %v3940_v42 = vmul.f32 0.5, %v1890_v25  ;;  %v1893_v44 = vadd.f32 %v2932_v39, %v3918_v35  ;;  %v1884_v11 = vpop.f32.mrb[79].mxu0  ;;  %v2060_v50 = vmul.f32 %v2028_v37, %v1964_v1 }
 0x4b7   : > { %v2063_v47 = vmul.f32 %v2031_v36, %v1967_v51  ;;  %v3943_v48 = vmul.f32 0.5, %v1882_v38  ;;  %v1885_v43 = vadd.f32 %v3918_v35, %v1884_v11 }
 0x4b8   : > { %v2061_v54 = vmul.f32 %v2029_v40, %v1965_v53  ;;  %3342 = vtanh.f32 %v3940_v42  ;;  %v1975_v45 = vmul.f32 0.5, %v1893_v44 }
 0x4b9   : > { %v2091_v46 = vpack.c.bf16 %v2063_v47, %v2062_v41  ;;  %3344 = vtanh.f32 %v3943_v48  ;;  %v1973_v57 = vmul.f32 0.5, %v1885_v43 }
 0x4ba   : > { %v3335_v58 = vpop.eup %3334  ;;  %3346 = vtanh.f32 %v1975_v45  ;;  %v2090_v49 = vpack.c.bf16 %v2061_v54, %v2060_v50 }
 0x4bb   : > { %v3337_v12 = vpop.eup %3336  ;;  %v2034_v52 = vadd.f32 1.0, %v3335_v58  ;;  %3348 = vtanh.f32 %v1973_v57  ;;  %v2935_v59 = vpop.f32.mrb[80].mxu0 }
 0x4bc   : > { %v3339_v60 = vpop.eup %3338  ;;  %v2032_v62 = vadd.f32 1.0, %v3337_v12  ;;  %v1906_v56 = vadd.f32 %v2935_v59, %v3918_v35  ;;  %v1897_v1 = vpop.f32.mrb[81].mxu0  ;;  %2969 = vmatprep.mubr.bf16.mxu1 %v2090_v49 }
 0x4bd   : > { %v3341_v55 = vpop.eup %3340  ;;  %v2035_v51 = vadd.f32 1.0, %v3339_v60  ;;  %v1898_v53 = vadd.f32 %v3918_v35, %v1897_v1  ;;  %v2936_v61 = vpop.f32.mrb[82].mxu0  ;;  %2970 = vmatmul.mubr.bf16.vlgmr.msra.gmra.mrb[64].mxu1 %v2091_v46  ;;  %v2066_v13 = vmul.f32 %v2034_v52, %v3930_v20 }
 0x4be   : > { %v2033_v2 = vadd.f32 1.0, %v3341_v55  ;;  %v3950_v3 = vmul.f32 0.5, %v1906_v56  ;;  %v1909_v63 = vadd.f32 %v2936_v61, %v3918_v35  ;;  %v1900_v0 = vpop.f32.mrb[83].mxu0  ;;  %v2064_v9 = vmul.f32 %v2032_v62, %v3933_v16 }
 0x4bf   : > { %v2067_v6 = vmul.f32 %v2035_v51, %v1971_v15  ;;  %v3954_v8 = vmul.f32 0.5, %v1898_v53  ;;  %v1901_v4 = vadd.f32 %v3918_v35, %v1900_v0 }
 0x4c0   : > { %v2065_v17 = vmul.f32 %v2033_v2, %v1969_v31  ;;  %3350 = vtanh.f32 %v3950_v3  ;;  %v1979_v7 = vmul.f32 0.5, %v1909_v63 }
 0x4c1   : > { %3352 = vtanh.f32 %v3954_v8  ;;  %v1977_v18 = vmul.f32 0.5, %v1901_v4  ;;  %v2093_v14 = vpack.c.bf16 %v2067_v6, %v2066_v13 }
 0x4c2   : > { %v3343_v5 = vpop.eup %3342  ;;  %3354 = vtanh.f32 %v1979_v7  ;;  %v2092_v21 = vpack.c.bf16 %v2065_v17, %v2064_v9 }
 0x4c3   : > { %v3345_v23 = vpop.eup %3344  ;;  %v2038_v20 = vadd.f32 1.0, %v3343_v5  ;;  %3356 = vtanh.f32 %v1977_v18  ;;  %v2939_v22 = vpop.f32.mrb[84].mxu0 }
 0x4c4   : > { %v3347_v26 = vpop.eup %3346  ;;  %v2036_v19 = vadd.f32 1.0, %v3345_v23  ;;  %v1922_v15 = vadd.f32 %v2939_v22, %v3918_v35  ;;  %v1913_v16 = vpop.f32.mrb[85].mxu0  ;;  %2973 = vmatprep.mubr.bf16.mxu1 %v2092_v21 }
 0x4c5   : > { %v3349_v24 = vpop.eup %3348  ;;  %v2039_v31 = vadd.f32 1.0, %v3347_v26  ;;  %v1914_v29 = vadd.f32 %v3918_v35, %v1913_v16  ;;  %v2940_v32 = vpop.f32.mrb[86].mxu0  ;;  %2974 = vmatmul.mubr.bf16.gmra.mrb[68].mxu1 %v2093_v14  ;;  %v2070_v37 = vmul.f32 %v2038_v20, %v3940_v42 }
 0x4c6   : > { %v2037_v27 = vadd.f32 1.0, %v3349_v24  ;;  %v3962_v28 = vmul.f32 0.5, %v1922_v15  ;;  %v1925_v10 = vadd.f32 %v2940_v32, %v3918_v35  ;;  %v1916_v34 = vpop.f32.mrb[87].mxu0  ;;  %v2068_v36 = vmul.f32 %v2036_v19, %v3943_v48 }
 0x4c7   : > { %v2071_v25 = vmul.f32 %v2039_v31, %v1975_v45  ;;  %v3966_v30 = vmul.f32 0.5, %v1914_v29  ;;  %v1917_v33 = vadd.f32 %v3918_v35, %v1916_v34 }
 0x4c8   : > { %v2069_v38 = vmul.f32 %v2037_v27, %v1973_v57  ;;  %3358 = vtanh.f32 %v3962_v28  ;;  %v1983_v39 = vmul.f32 0.5, %v1925_v10 }
 0x4c9   : > { %3360 = vtanh.f32 %v3966_v30  ;;  %v1981_v40 = vmul.f32 0.5, %v1917_v33  ;;  %v2095_v44 = vpack.c.bf16 %v2071_v25, %v2070_v37 }
 0x4ca   : > { %v3351_v11 = vpop.eup %3350  ;;  %3362 = vtanh.f32 %v1983_v39  ;;  %v2094_v41 = vpack.c.bf16 %v2069_v38, %v2068_v36 }
 0x4cb   : > { %v3353_v47 = vpop.eup %3352  ;;  %v2042_v42 = vadd.f32 1.0, %v3351_v11  ;;  %3364 = vtanh.f32 %v1981_v40  ;;  %v2943_v43 = vpop.f32.mrb[88].mxu0 }
 0x4cc   : > { %v3355_v50 = vpop.eup %3354  ;;  %v2040_v54 = vadd.f32 1.0, %v3353_v47  ;;  %v1938_v45 = vadd.f32 %v2943_v43, %v3918_v35  ;;  %v1929_v48 = vpop.f32.mrb[89].mxu0  ;;  %2977 = vmatprep.mubr.bf16.mxu1 %v2094_v41 }
 0x4cd   : > { %v3357_v46 = vpop.eup %3356  ;;  %v2043_v57 = vadd.f32 1.0, %v3355_v50  ;;  %v1930_v58 = vadd.f32 %v3918_v35, %v1929_v48  ;;  %v2944_v49 = vpop.f32.mrb[90].mxu0  ;;  %2978 = vmatmul.mubr.bf16.gmra.mrb[72].mxu1 %v2095_v44  ;;  %v2074_v62 = vmul.f32 %v2042_v42, %v3950_v3 }
 0x4ce   : > { %v2041_v12 = vadd.f32 1.0, %v3357_v46  ;;  %v1986_v52 = vmul.f32 0.5, %v1938_v45  ;;  %v1941_v59 = vadd.f32 %v2944_v49, %v3918_v35  ;;  %v1932_v60 = vpop.f32.mrb[91].mxu0  ;;  %v2072_v51 = vmul.f32 %v2040_v54, %v3954_v8 }
 0x4cf   : > { %v2075_v56 = vmul.f32 %v2043_v57, %v1979_v7  ;;  %v1984_v1 = vmul.f32 0.5, %v1930_v58  ;;  %v1933_v55 = vadd.f32 %v3918_v35, %v1932_v60 }
 0x4d0   : > { %v2073_v53 = vmul.f32 %v2041_v12, %v1977_v18  ;;  %3366 = vtanh.f32 %v1986_v52  ;;  %v1987_v61 = vmul.f32 0.5, %v1941_v59 }
 0x4d1   : > { %3368 = vtanh.f32 %v1984_v1  ;;  %v1985_v2 = vmul.f32 0.5, %v1933_v55  ;;  %v2097_v63 = vpack.c.bf16 %v2075_v56, %v2074_v62  ;;  %v3987_v62 = vld [vmem:[%s4097_s2 + $0x5] ss:$0 sm:$0xff] }
 0x4d2   : > { %v3359_v0 = vpop.eup %3358  ;;  %3370 = vtanh.f32 %v1987_v61  ;;  %v2096_v13 = vpack.c.bf16 %v2073_v53, %v2072_v51 }
 0x4d3   : > { %v3361_v6 = vpop.eup %3360  ;;  %v2046_v4 = vadd.f32 1.0, %v3359_v0  ;;  %3372 = vtanh.f32 %v1985_v2  ;;  %v2947_v9 = vpop.f32.mrb[92].mxu0 }
 0x4d4   : > { %v3363_v3 = vpop.eup %3362  ;;  %v2044_v17 = vadd.f32 1.0, %v3361_v6  ;;  %v1954_v7 = vadd.f32 %v2947_v9, %v3918_v35  ;;  %v1945_v14 = vpop.f32.mrb[93].mxu0  ;;  %2981 = vmatprep.mubr.bf16.mxu1 %v2096_v13 }
 0x4d5   : > { %v3365_v8 = vpop.eup %3364  ;;  %v2047_v18 = vadd.f32 1.0, %v3363_v3  ;;  %v1946_v5 = vadd.f32 %v3918_v35, %v1945_v14  ;;  %v2948_v21 = vpop.f32.mrb[94].mxu0  ;;  %2982 = vmatmul.mubr.bf16.gmra.mrb[76].mxu1 %v2097_v63  ;;  %v2078_v19 = vmul.f32 %v2046_v4, %v3962_v28 }
 0x4d6   : > { %v2045_v23 = vadd.f32 1.0, %v3365_v8  ;;  %v1990_v20 = vmul.f32 0.5, %v1954_v7  ;;  %v1957_v22 = vadd.f32 %v2948_v21, %v3918_v35  ;;  %v1948_v26 = vpop.f32.mrb[95].mxu0  ;;  %v2076_v31 = vmul.f32 %v2044_v17, %v3966_v30 }
 0x4d7   : > { %v2079_v15 = vmul.f32 %v2047_v18, %v1983_v39  ;;  %v1988_v16 = vmul.f32 0.5, %v1946_v5  ;;  %v1949_v24 = vadd.f32 %v3918_v35, %v1948_v26 }
 0x4d8   : > { %v2077_v29 = vmul.f32 %v2045_v23, %v1981_v40  ;;  %3374 = vtanh.f32 %v1990_v20  ;;  %v1991_v32 = vmul.f32 0.5, %v1957_v22 }
 0x4d9   : > { %3376 = vtanh.f32 %v1988_v16  ;;  %v1989_v27 = vmul.f32 0.5, %v1949_v24  ;;  %v2099_v10 = vpack.c.bf16 %v2079_v15, %v2078_v19 }
 0x4da   : > { %v3367_v34 = vpop.eup %3366  ;;  %3378 = vtanh.f32 %v1991_v32  ;;  %v2098_v37 = vpack.c.bf16 %v2077_v29, %v2076_v31 }
 0x4db   : > { %v3369_v25 = vpop.eup %3368  ;;  %v2050_v33 = vadd.f32 1.0, %v3367_v34  ;;  %3380 = vtanh.f32 %v1989_v27 }
 0x4dc   : > { %v3371_v36 = vpop.eup %3370  ;;  %v2048_v28 = vadd.f32 1.0, %v3369_v25  ;;  %2985 = vmatprep.mubr.bf16.mxu1 %v2098_v37 }
 0x4dd   : > { %v3373_v38 = vpop.eup %3372  ;;  %v2051_v39 = vadd.f32 1.0, %v3371_v36  ;;  %2986 = vmatmul.mubr.bf16.gmra.mrb[80].mxu1 %v2099_v10  ;;  %v2082_v30 = vmul.f32 %v2050_v33, %v1986_v52 }
 0x4de   : > { %v2049_v35 = vadd.f32 1.0, %v3373_v38  ;;  %v2080_v44 = vmul.f32 %v2048_v28, %v1984_v1 }
 0x4df   : > { %v2083_v40 = vmul.f32 %v2051_v39, %v1987_v61 }
 0x4e0   : > { %v2081_v11 = vmul.f32 %v2049_v35, %v1985_v2 }
 0x4e1   : > { %v2101_v41 = vpack.c.bf16 %v2083_v40, %v2082_v30 }
 0x4e2   : > { %v3375_v47 = vpop.eup %3374  ;;  %v2100_v42 = vpack.c.bf16 %v2081_v11, %v2080_v44 }
 0x4e3   : > { %v3377_v43 = vpop.eup %3376  ;;  %v2054_v50 = vadd.f32 1.0, %v3375_v47 }
 0x4e4   : > { %v3379_v54 = vpop.eup %3378  ;;  %v2052_v45 = vadd.f32 1.0, %v3377_v43  ;;  %2989 = vmatprep.mubr.bf16.mxu1 %v2100_v42 }
 0x4e5   : > { %v3381_v48 = vpop.eup %3380  ;;  %v2055_v46 = vadd.f32 1.0, %v3379_v54  ;;  %2990 = vmatmul.mubr.bf16.gmra.mrb[84].mxu1 %v2101_v41  ;;  %v2086_v58 = vmul.f32 %v2054_v50, %v1990_v20 }
 0x4e6   : > { %v2053_v57 = vadd.f32 1.0, %v3381_v48  ;;  %v2084_v12 = vmul.f32 %v2052_v45, %v1988_v16 }
 0x4e7   : > { %v2087_v49 = vmul.f32 %v2055_v46, %v1991_v32 }
 0x4e8   : > { %v2085_v52 = vmul.f32 %v2053_v57, %v1989_v27 }
 0x4e9   : > { %v2103_v59 = vpack.c.bf16 %v2087_v49, %v2086_v58 }
 0x4ea   : > { %v2102_v60 = vpack.c.bf16 %v2085_v52, %v2084_v12 }
 0x4ec   : > { %2993 = vmatprep.mubr.bf16.mxu1 %v2102_v60 }
 0x4ed   : > { %2994 = vmatmul.mubr.bf16.gmra.mrb[88].mxu1 %v2103_v59 }
 0x588   : > { %v2967_v56 = vpop.f32.mrb[96].mxu0 }
 0x589   : > { %v2220_v1 = vadd.f32 %v2967_v56, %v3987_v62  ;;  %v2211_v55 = vpop.f32.mrb[97].mxu0 }
 0x58a   : > { %v2212_v51 = vadd.f32 %v3987_v62, %v2211_v55  ;;  %v2968_v53 = vpop.f32.mrb[98].mxu0 }
 0x58b   : > { %2341 = vst.msk [vmem:[%s3994_s18 + $0x10] sm:$0xff] %vm2338_vm1, %v2220_v1  ;;  %v2223_v61 = vadd.f32 %v2968_v53, %v3987_v62  ;;  %v2214_v2 = vpop.f32.mrb[99].mxu0 }
 0x58c   : > { %2339 = vst.msk [vmem:[%s3994_s18] sm:$0xff] %vm2338_vm1, %v2212_v51  ;;  %v2215_v63 = vadd.f32 %v3987_v62, %v2214_v2 }
 0x58d   : > { %2342 = vst.msk [vmem:[%s3994_s18 + $0x18] sm:$0xff] %vm2338_vm1, %v2223_v61 }
 0x58e   : > { %2340 = vst.msk [vmem:[%s3994_s18 + $0x8] sm:$0xff] %vm2338_vm1, %v2215_v63 }
 0x590   : > { %v2971_v0 = vpop.f32.mrb[64].mxu1 }
 0x591   : > { %v2236_v13 = vadd.f32 %v2971_v0, %v3987_v62  ;;  %v2227_v6 = vpop.f32.mrb[65].mxu1 }
 0x592   : > { %v2228_v4 = vadd.f32 %v3987_v62, %v2227_v6  ;;  %v2972_v9 = vpop.f32.mrb[66].mxu1 }
 0x593   : > { %2345 = vst.msk [vmem:[%s3994_s18 + $0x30] sm:$0xff] %vm2338_vm1, %v2236_v13  ;;  %v2239_v3 = vadd.f32 %v2972_v9, %v3987_v62  ;;  %v2230_v17 = vpop.f32.mrb[67].mxu1 }
 0x594   : > { %2343 = vst.msk [vmem:[%s3994_s18 + $0x20] sm:$0xff] %vm2338_vm1, %v2228_v4  ;;  %v2231_v7 = vadd.f32 %v3987_v62, %v2230_v17 }
 0x595   : > { %2346 = vst.msk [vmem:[%s3994_s18 + $0x38] sm:$0xff] %vm2338_vm1, %v2239_v3 }
 0x596   : > { %2344 = vst.msk [vmem:[%s3994_s18 + $0x28] sm:$0xff] %vm2338_vm1, %v2231_v7 }
 0x598   : > { %v2975_v14 = vpop.f32.mrb[68].mxu1 }
 0x599   : > { %v2252_v8 = vadd.f32 %v2975_v14, %v3987_v62  ;;  %v2243_v18 = vpop.f32.mrb[69].mxu1 }
 0x59a   : > { %v2244_v5 = vadd.f32 %v3987_v62, %v2243_v18  ;;  %v2976_v21 = vpop.f32.mrb[70].mxu1 }
 0x59b   : > { %2349 = vst.msk [vmem:[%s3994_s18 + $0x50] sm:$0xff] %vm2338_vm1, %v2252_v8  ;;  %v2255_v23 = vadd.f32 %v2976_v21, %v3987_v62  ;;  %v2246_v20 = vpop.f32.mrb[71].mxu1 }
 0x59c   : > { %2347 = vst.msk [vmem:[%s3994_s18 + $0x40] sm:$0xff] %vm2338_vm1, %v2244_v5  ;;  %v2247_v22 = vadd.f32 %v3987_v62, %v2246_v20 }
 0x59d   : > { %2350 = vst.msk [vmem:[%s3994_s18 + $0x58] sm:$0xff] %vm2338_vm1, %v2255_v23 }
 0x59e   : > { %2348 = vst.msk [vmem:[%s3994_s18 + $0x48] sm:$0xff] %vm2338_vm1, %v2247_v22 }
 0x5a0   : > { %v2979_v26 = vpop.f32.mrb[72].mxu1 }
 0x5a1   : > { %v2268_v19 = vadd.f32 %v2979_v26, %v3987_v62  ;;  %v2259_v15 = vpop.f32.mrb[73].mxu1 }
 0x5a2   : > { %v2260_v16 = vadd.f32 %v3987_v62, %v2259_v15  ;;  %v2980_v24 = vpop.f32.mrb[74].mxu1 }
 0x5a3   : > { %2353 = vst.msk [vmem:[%s3994_s18 + $0x70] sm:$0xff] %vm2338_vm1, %v2268_v19  ;;  %v2271_v31 = vadd.f32 %v2980_v24, %v3987_v62  ;;  %v2262_v29 = vpop.f32.mrb[75].mxu1 }
 0x5a4   : > { %2351 = vst.msk [vmem:[%s3994_s18 + $0x60] sm:$0xff] %vm2338_vm1, %v2260_v16  ;;  %v2263_v32 = vadd.f32 %v3987_v62, %v2262_v29 }
 0x5a5   : > { %2354 = vst.msk [vmem:[%s3994_s18 + $0x78] sm:$0xff] %vm2338_vm1, %v2271_v31 }
 0x5a6   : > { %2352 = vst.msk [vmem:[%s3994_s18 + $0x68] sm:$0xff] %vm2338_vm1, %v2263_v32 }
 0x5a8   : > { %v2983_v27 = vpop.f32.mrb[76].mxu1 }
 0x5a9   : > { %v2284_v10 = vadd.f32 %v2983_v27, %v3987_v62  ;;  %v2275_v34 = vpop.f32.mrb[77].mxu1 }
 0x5aa   : > { %v2276_v37 = vadd.f32 %v3987_v62, %v2275_v34  ;;  %v2984_v25 = vpop.f32.mrb[78].mxu1 }
 0x5ab   : > { %2357 = vst.msk [vmem:[%s3994_s18 + $0x90] sm:$0xff] %vm2338_vm1, %v2284_v10  ;;  %v2287_v33 = vadd.f32 %v2984_v25, %v3987_v62  ;;  %v2278_v36 = vpop.f32.mrb[79].mxu1 }
 0x5ac   : > { %2355 = vst.msk [vmem:[%s3994_s18 + $0x80] sm:$0xff] %vm2338_vm1, %v2276_v37  ;;  %v2279_v28 = vadd.f32 %v3987_v62, %v2278_v36 }
 0x5ad   : > { %2358 = vst.msk [vmem:[%s3994_s18 + $0x98] sm:$0xff] %vm2338_vm1, %v2287_v33 }
 0x5ae   : > { %2356 = vst.msk [vmem:[%s3994_s18 + $0x88] sm:$0xff] %vm2338_vm1, %v2279_v28 }
 0x5b0   : > { %v2987_v38 = vpop.f32.mrb[80].mxu1 }
 0x5b1   : > { %v2300_v39 = vadd.f32 %v2987_v38, %v3987_v62  ;;  %v2291_v35 = vpop.f32.mrb[81].mxu1 }
 0x5b2   : > { %v2292_v30 = vadd.f32 %v3987_v62, %v2291_v35  ;;  %v2988_v40 = vpop.f32.mrb[82].mxu1 }
 0x5b3   : > { %2361 = vst.msk [vmem:[%s3994_s18 + $0xb0] sm:$0xff] %vm2338_vm1, %v2300_v39  ;;  %v2303_v44 = vadd.f32 %v2988_v40, %v3987_v62  ;;  %v2294_v11 = vpop.f32.mrb[83].mxu1 }
 0x5b4   : > { %2359 = vst.msk [vmem:[%s3994_s18 + $0xa0] sm:$0xff] %vm2338_vm1, %v2292_v30  ;;  %v2295_v41 = vadd.f32 %v3987_v62, %v2294_v11 }
 0x5b5   : > { %2362 = vst.msk [vmem:[%s3994_s18 + $0xb8] sm:$0xff] %vm2338_vm1, %v2303_v44 }
 0x5b6   : > { %2360 = vst.msk [vmem:[%s3994_s18 + $0xa8] sm:$0xff] %vm2338_vm1, %v2295_v41 }
 0x5b8   : > { %v2991_v47 = vpop.f32.mrb[84].mxu1 }
 0x5b9   : > { %v2316_v42 = vadd.f32 %v2991_v47, %v3987_v62  ;;  %v2307_v43 = vpop.f32.mrb[85].mxu1 }
 0x5ba   : > { %v2308_v50 = vadd.f32 %v3987_v62, %v2307_v43  ;;  %v2992_v54 = vpop.f32.mrb[86].mxu1 }
 0x5bb   : > { %2365 = vst.msk [vmem:[%s3994_s18 + $0xd0] sm:$0xff] %vm2338_vm1, %v2316_v42  ;;  %v2319_v45 = vadd.f32 %v2992_v54, %v3987_v62  ;;  %v2310_v48 = vpop.f32.mrb[87].mxu1 }
 0x5bc   : > { %2363 = vst.msk [vmem:[%s3994_s18 + $0xc0] sm:$0xff] %vm2338_vm1, %v2308_v50  ;;  %v2311_v46 = vadd.f32 %v3987_v62, %v2310_v48 }
 0x5bd   : > { %2366 = vst.msk [vmem:[%s3994_s18 + $0xd8] sm:$0xff] %vm2338_vm1, %v2319_v45 }
 0x5be   : > { %2364 = vst.msk [vmem:[%s3994_s18 + $0xc8] sm:$0xff] %vm2338_vm1, %v2311_v46 }
 0x5c0   : > { %v2995_v57 = vpop.f32.mrb[88].mxu1 }
 0x5c1   : > { %v2332_v58 = vadd.f32 %v2995_v57, %v3987_v62  ;;  %v2323_v49 = vpop.f32.mrb[89].mxu1 }
 0x5c2   : > { %v2324_v12 = vadd.f32 %v3987_v62, %v2323_v49  ;;  %v2996_v52 = vpop.f32.mrb[90].mxu1 }
 0x5c3   : > { %2369 = vst.msk [vmem:[%s3994_s18 + $0xf0] sm:$0xff] %vm2338_vm1, %v2332_v58  ;;  %v2335_v59 = vadd.f32 %v2996_v52, %v3987_v62  ;;  %v2326_v60 = vpop.f32.mrb[91].mxu1 }
 0x5c4   : > { %2367 = vst.msk [vmem:[%s3994_s18 + $0xe0] sm:$0xff] %vm2338_vm1, %v2324_v12  ;;  %v2327_v56 = vadd.f32 %v3987_v62, %v2326_v60 }
 0x5c5   : > { %2370 = vst.msk [vmem:[%s3994_s18 + $0xf8] sm:$0xff] %vm2338_vm1, %v2335_v59 }
 0x5c6   : > { %2368 = vst.msk [vmem:[%s3994_s18 + $0xe8] sm:$0xff] %vm2338_vm1, %v2327_v56 }
 0x5c7 PF: > { %s13_s12 = sadd.s32 1, %s3388_s12  }
 0x5c8   : > { %p10_p4 = scmp.ge.s32.totalorder %s13_s12, 4  }
 0x5ca   :  { %12 = sbr.rel (!%p10_p4) target bundleno = 1 (0x1), region = 72 }

</bundles_post_ra>
